<compile_context>
chip_gen: v5e
topology: v5e:2x2
jax: 0.10.0
libtpu: 0.0.40
codegen_flags: <defaults>
</compile_context>

<pallas_src>
import functools

import jax
import jax.numpy as jnp
from jax.experimental import pallas as pl
from jax.experimental.pallas import tpu as pltpu


_ROW_TILE = 512   # row tile for row-tiled kernels (multiple of 8)
_COL_TILE = 512   # output-column tile for linears (multiple of 128)
_K_TILE = 512     # reduction tile cap for linears


# ------------------------------ device helpers -------------------------------
def _tpu_vmem_capacity_bytes():
    try:
        return int(pltpu.get_tpu_info().vmem_capacity_bytes)
    except Exception:
        return 64 << 20          # conservative fallback (v7x per-core VMEM)


def _pad(v, m):
    return ((v + m - 1) // m) * m


def _reduction_tile(k):
    """Exact-divisor reduction tile (avoids garbage accumulation from padded K blocks)."""
    if k <= _K_TILE:
        return k
    for t in (512, 256, 128, 64, 32, 16, 8):
        if k % t == 0:
            return t
    return k   # no aligned divisor: keep K whole (correctness over tiling)


# ----------------------------- LayerNorm kernel ------------------------------
def _layernorm_kernel(x_ref, g_ref, b_ref, o_ref, *, eps):
    x = x_ref[...].astype(jnp.float32)
    mean = jnp.mean(x, axis=-1, keepdims=True)
    xc = x - mean
    var = jnp.mean(xc * xc, axis=-1, keepdims=True)   # biased variance, as torch LayerNorm
    inv = jax.lax.rsqrt(var + eps)
    y = xc * inv * g_ref[...].astype(jnp.float32) + b_ref[...].astype(jnp.float32)
    o_ref[...] = y.astype(o_ref.dtype)


def layer_norm(x, gamma, beta, eps):
    m, c = x.shape
    tm = min(m, _ROW_TILE)
    return pl.pallas_call(
        functools.partial(_layernorm_kernel, eps=eps),
        out_shape=jax.ShapeDtypeStruct((m, c), x.dtype),
        grid=(pl.cdiv(m, tm),),
        in_specs=[
            pl.BlockSpec((tm, c), lambda i: (i, 0)),
            pl.BlockSpec((1, c), lambda i: (0, 0)),
            pl.BlockSpec((1, c), lambda i: (0, 0)),
        ],
        out_specs=pl.BlockSpec((tm, c), lambda i: (i, 0)),
        compiler_params=pltpu.CompilerParams(dimension_semantics=("parallel",)),
    )(x, gamma.reshape(1, c), beta.reshape(1, c))


# --------------------------- Linear (K-tiled) kernel --------------------------
def _linear_kernel(x_ref, w_ref, b_ref, o_ref, acc_ref):
    @pl.when(pl.program_id(2) == 0)
    def _():
        acc_ref[...] = jnp.zeros_like(acc_ref)

    acc_ref[...] += jnp.dot(x_ref[...], w_ref[...], preferred_element_type=jnp.float32)

    @pl.when(pl.program_id(2) == pl.num_programs(2) - 1)
    def _():
        o_ref[...] = (acc_ref[...] + b_ref[...].astype(jnp.float32)).astype(o_ref.dtype)


def linear(x, w, b):
    m, k = x.shape
    _, n = w.shape
    tm = min(m, _ROW_TILE)
    tn = min(n, _COL_TILE)
    tk = _reduction_tile(k)
    return pl.pallas_call(
        _linear_kernel,
        out_shape=jax.ShapeDtypeStruct((m, n), x.dtype),
        grid=(pl.cdiv(m, tm), pl.cdiv(n, tn), k // tk),
        in_specs=[
            pl.BlockSpec((tm, tk), lambda i, j, kk: (i, kk)),
            pl.BlockSpec((tk, tn), lambda i, j, kk: (kk, j)),
            pl.BlockSpec((1, tn), lambda i, j, kk: (0, j)),
        ],
        out_specs=pl.BlockSpec((tm, tn), lambda i, j, kk: (i, j)),
        scratch_shapes=[pltpu.VMEM((tm, tn), jnp.float32)],
        compiler_params=pltpu.CompilerParams(
            dimension_semantics=("parallel", "parallel", "arbitrary")),
    )(x, w, b.reshape(1, n))


# ------------------ Fused KV projection (two outputs, one x read) -------------
def _linear_kv_kernel(x_ref, wk_ref, wv_ref, bk_ref, bv_ref, k_ref, v_ref,
                      acck_ref, accv_ref):
    @pl.when(pl.program_id(2) == 0)
    def _():
        acck_ref[...] = jnp.zeros_like(acck_ref)
        accv_ref[...] = jnp.zeros_like(accv_ref)

    x = x_ref[...]
    acck_ref[...] += jnp.dot(x, wk_ref[...], preferred_element_type=jnp.float32)
    accv_ref[...] += jnp.dot(x, wv_ref[...], preferred_element_type=jnp.float32)

    @pl.when(pl.program_id(2) == pl.num_programs(2) - 1)
    def _():
        k_ref[...] = (acck_ref[...] + bk_ref[...].astype(jnp.float32)).astype(k_ref.dtype)
        v_ref[...] = (accv_ref[...] + bv_ref[...].astype(jnp.float32)).astype(v_ref.dtype)


def linear_kv(x, wk, wv, bk, bv):
    m, kdim = x.shape
    n = wk.shape[1]
    tm = min(m, _ROW_TILE)
    tn = min(n, _COL_TILE)
    tk = _reduction_tile(kdim)
    wspec = pl.BlockSpec((tk, tn), lambda i, j, kk: (kk, j))
    bspec = pl.BlockSpec((1, tn), lambda i, j, kk: (0, j))
    ospec = pl.BlockSpec((tm, tn), lambda i, j, kk: (i, j))
    return pl.pallas_call(
        _linear_kv_kernel,
        out_shape=(jax.ShapeDtypeStruct((m, n), x.dtype),
                   jax.ShapeDtypeStruct((m, n), x.dtype)),
        grid=(pl.cdiv(m, tm), pl.cdiv(n, tn), kdim // tk),
        in_specs=[pl.BlockSpec((tm, tk), lambda i, j, kk: (i, kk)),
                  wspec, wspec, bspec, bspec],
        out_specs=(ospec, ospec),
        scratch_shapes=[pltpu.VMEM((tm, tn), jnp.float32),
                        pltpu.VMEM((tm, tn), jnp.float32)],
        compiler_params=pltpu.CompilerParams(
            dimension_semantics=("parallel", "parallel", "arbitrary")),
    )(x, wk, wv, bk.reshape(1, n), bv.reshape(1, n))


# -------- Fused multi-head attention + output-projection kernel --------------
def _attn_proj_kernel(q_ref, k_ref, v_ref, wp_ref, bp_ref, o_ref, *rest,
                      scale, return_attn):
    if return_attn:
        a_ref, oacc_ref = rest
    else:
        a_ref = None
        (oacc_ref,) = rest

    H, tq, dh = q_ref.shape[1], q_ref.shape[2], q_ref.shape[3]

    # Fold the softmax scale into q once (H*tq*dh multiplies, not H*tq*nkv).
    q = q_ref[0] * scale            # stays in input dtype (bf16-safe on the MXU)
    k = k_ref[0]                    # (H, nkv, dh)
    v = v_ref[0]

    # Q @ K^T batched over heads, input dtype on the MXU, f32 accumulation.
    s = jax.lax.dot_general(q, k, (((2,), (2,)), ((0,), (0,))),
                            preferred_element_type=jnp.float32)      # (H, tq, nkv)

    # Softmax in f32.  Padded rows of a partial final q tile may contain garbage; all ops
    # below are row-independent and those rows are masked on store, so this is benign.
    s = s - jnp.max(s, axis=-1, keepdims=True)
    e = jnp.exp(s)
    p = e * pl.reciprocal(jnp.sum(e, axis=-1, keepdims=True),
                          approx=not return_attn)   # exact when probs are returned

    if a_ref is not None:
        a_ref[0] = p.astype(a_ref.dtype)

    # P @ V batched over heads (probs cast back to the input dtype for the MXU).
    pv = jax.lax.dot_general(p.astype(v.dtype), v, (((2,), (1,)), ((0,), (0,))),
                             preferred_element_type=jnp.float32)     # (H, tq, dh)

    # Scatter head outputs into a lane-dense (tq, C) f32 scratch (bounds live ranges,
    # no concat), then run ONE full-contraction-depth output-projection matmul.
    for hh in range(H):
        oacc_ref[:, hh * dh:(hh + 1) * dh] = pv[hh]

    o = jnp.dot(oacc_ref[...].astype(wp_ref.dtype), wp_ref[...],
                preferred_element_type=jnp.float32)
    o_ref[0] = (o + bp_ref[...].astype(jnp.float32)).astype(o_ref.dtype)


def _attn_vmem_bytes(tq, H, nkv, dh, C, isz, a_isz, return_attn):
    """Rough double-buffered VMEM estimate (lane dim padded to 128, sublane to 8)."""
    q_blk = H * _pad(tq, 8) * _pad(dh, 128) * isz
    kv_blk = H * _pad(nkv, 8) * _pad(dh, 128) * isz
    o_blk = _pad(tq, 8) * _pad(C, 128) * isz
    w_blk = _pad(C, 8) * _pad(C, 128) * isz
    b_blk = 8 * _pad(C, 128) * isz
    scratch = _pad(tq, 8) * _pad(C, 128) * 4
    total = 2 * q_blk + 2 * 2 * kv_blk + 2 * (w_blk + b_blk) + 2 * o_blk + scratch
    if return_attn:
        total += 2 * H * _pad(tq, 8) * _pad(nkv, 128) * a_isz
    return total


def attention_proj(q_heads, k_heads, v_heads, wproj, bproj, *, scale,
                   return_attn=True, attn_dtype=None):
    """q/k/v are head-major (B, H, seq, dh).  Returns (x_out (B,N,C), attn or None)."""
    B, H, N, dh = q_heads.shape
    nkv = k_heads.shape[2]
    C = H * dh
    a_dtype = jnp.dtype(attn_dtype) if attn_dtype is not None else q_heads.dtype
    isz = jnp.dtype(q_heads.dtype).itemsize

    # Generation-aware tile / VMEM budget (v5e/v6e: 128 MiB, v7x: 64 MiB physical).
    phys = _tpu_vmem_capacity_bytes()
    budget = min(phys // 2, 96 << 20)
    cap = 256 if return_attn else 512      # smaller q tile when the (H,tq,nkv) probs ride along

    def est(t):
        return _attn_vmem_bytes(t, H, nkv, dh, C, isz, jnp.dtype(a_dtype).itemsize,
                                return_attn)

    cands = [min(N, cap)] + [c for c in (256, 128, 64) if c < min(N, cap)]
    tq = cands[-1]
    for c in cands:
        if est(c) <= budget:
            tq = c
            break
    vmem_limit = int(min(max(budget, est(tq) + (4 << 20)), phys))

    grid = (B, pl.cdiv(N, tq))
    in_specs = [
        pl.BlockSpec((1, H, tq, dh), lambda b, i: (b, 0, i, 0)),
        # K/V and the proj weight/bias use constant index maps along the q-tile axis,
        # so they stay resident in VMEM across the q tiles of a batch element.
        # TODO(synk): single-buffer these constant blocks (pl.Buffered(1)) once supported,
        # to free their second buffer on v7x's 64 MiB VMEM.
        pl.BlockSpec((1, H, nkv, dh), lambda b, i: (b, 0, 0, 0)),
        pl.BlockSpec((1, H, nkv, dh), lambda b, i: (b, 0, 0, 0)),
        pl.BlockSpec((C, C), lambda b, i: (0, 0)),
        pl.BlockSpec((1, C), lambda b, i: (0, 0)),
    ]
    if return_attn:
        out_shape = (jax.ShapeDtypeStruct((B, N, C), q_heads.dtype),
                     jax.ShapeDtypeStruct((B, H, N, nkv), a_dtype))
        out_specs = (pl.BlockSpec((1, tq, C), lambda b, i: (b, i, 0)),
                     pl.BlockSpec((1, H, tq, nkv), lambda b, i: (b, 0, i, 0)))
    else:
        out_shape = jax.ShapeDtypeStruct((B, N, C), q_heads.dtype)
        out_specs = pl.BlockSpec((1, tq, C), lambda b, i: (b, i, 0))

    res = pl.pallas_call(
        functools.partial(_attn_proj_kernel, scale=scale, return_attn=return_attn),
        out_shape=out_shape,
        grid=grid,
        in_specs=in_specs,
        out_specs=out_specs,
        scratch_shapes=[pltpu.VMEM((tq, C), jnp.float32)],
        compiler_params=pltpu.CompilerParams(
            # Both axes independent: lets megacore (v7x, 2 TCs) shard batch AND q tiles.
            dimension_semantics=("parallel", "parallel"),
            vmem_limit_bytes=vmem_limit),
    )(q_heads, k_heads, v_heads, wproj, bproj.reshape(1, C))

    if return_attn:
        x_out, attn = res
        return x_out, attn
    return res, None


# ------------------------------ Parameter setup ------------------------------
def init_params(key, dim, sr_ratio):
    ks = jax.random.split(key, 10)
    std = 0.02
    p = {
        "wq": std * jax.random.normal(ks[0], (dim, dim), jnp.float32),
        "bq": std * jax.random.normal(ks[1], (dim,), jnp.float32),
        # kv Linear stored as two halves so K and V are produced as separate outputs
        # (avoids materializing + slicing a (B*nkv, 2C) tensor in HBM).
        "wk": std * jax.random.normal(ks[2], (dim, dim), jnp.float32),
        "bk": std * jax.random.normal(ks[3], (dim,), jnp.float32),
        "wv": std * jax.random.normal(ks[4], (dim, dim), jnp.float32),
        "bv": std * jax.random.normal(ks[5], (dim,), jnp.float32),
        "wproj": std * jax.random.normal(ks[6], (dim, dim), jnp.float32),
        "bproj": std * jax.random.normal(ks[7], (dim,), jnp.float32),
    }
    if sr_ratio > 1:
        p["wsr"] = std * jax.random.normal(ks[8], (sr_ratio * sr_ratio * dim, dim), jnp.float32)
        p["bsr"] = std * jax.random.normal(ks[9], (dim,), jnp.float32)
        p["lnsr_g"] = jnp.ones((dim,), jnp.float32)
        p["lnsr_b"] = jnp.zeros((dim,), jnp.float32)
    return p


# ------------------------------ Full forward pass ----------------------------
def efficient_self_attention_forward(params, x, h, w, *, num_heads, sr_ratio,
                                     return_attn=True, attn_dtype=None):
    B, N, C = x.shape
    assert C % num_heads == 0
    dh = C // num_heads
    scale = dh ** -0.5

    x2 = x.reshape(B * N, C)
    q_lin = linear(x2, params["wq"], params["bq"])                       # (B*N, C)
    # head-major layout: consumed by the fused kernel AND returned as attn_output['query']
    q_heads = q_lin.reshape(B, N, num_heads, dh).transpose(0, 2, 1, 3)

    if sr_ratio > 1:
        nh, nw = h // sr_ratio, w // sr_ratio
        nkv = nh * nw
        x_img = x.reshape(B, h, w, C)
        patches = x_img.reshape(B, nh, sr_ratio, nw, sr_ratio, C)
        patches = patches.transpose(0, 1, 3, 2, 4, 5).reshape(B * nkv, sr_ratio * sr_ratio * C)
        x_sr = linear(patches, params["wsr"], params["bsr"])             # sr conv as patch matmul
        x_kv = layer_norm(x_sr, params["lnsr_g"], params["lnsr_b"], 1e-5)
    else:
        nkv = N
        x_kv = x2

    k_lin, v_lin = linear_kv(x_kv, params["wk"], params["wv"], params["bk"], params["bv"])
    k_heads = k_lin.reshape(B, nkv, num_heads, dh).transpose(0, 2, 1, 3)
    v_heads = v_lin.reshape(B, nkv, num_heads, dh).transpose(0, 2, 1, 3)

    # fused attention (all heads per step, q-tiled, head-batched matmuls) + output projection
    x_out, attn = attention_proj(q_heads, k_heads, v_heads,
                                 params["wproj"], params["bproj"],
                                 scale=scale, return_attn=return_attn,
                                 attn_dtype=attn_dtype)

    attn_output = {"key": k_heads, "query": q_heads, "value": v_heads,
                   "attn": attn, "x": x_out}
    return x_out, attn_output


# ----------------------------------- Demo ------------------------------------
if __name__ == "__main__":
    dim, num_heads, sr_ratio = 32, 2, 2
    B, h, w = 2, 8, 8
    N = h * w

    key = jax.random.PRNGKey(0)
    kp, kx = jax.random.split(key)
    params = init_params(kp, dim, sr_ratio)
    x = jax.random.normal(kx, (B, N, dim), jnp.float32)

    fwd = jax.jit(
        functools.partial(efficient_self_attention_forward,
                          num_heads=num_heads, sr_ratio=sr_ratio, return_attn=True),
        static_argnums=(2, 3),
    )
    y, attn_out = fwd(params, x, h, w)
    jax.block_until_ready((y, attn_out))

    nkv = (h // sr_ratio) * (w // sr_ratio)
    dh = dim // num_heads
    assert y.shape == (B, N, dim)
    assert attn_out["attn"].shape == (B, num_heads, N, nkv)
    assert attn_out["query"].shape == (B, num_heads, N, dh)
    assert attn_out["key"].shape == (B, num_heads, nkv, dh)
    assert attn_out["value"].shape == (B, num_heads, nkv, dh)
    assert attn_out["x"].shape == (B, N, dim)

    # pure-JAX reference (same parameterization) for a numerical sanity check
    def reference(params, x, h, w):
        Bq, Nq, C = x.shape
        dhh = C // num_heads
        sc = dhh ** -0.5
        q = x @ params["wq"] + params["bq"]
        qh = q.reshape(Bq, Nq, num_heads, dhh).transpose(0, 2, 1, 3)
        if sr_ratio > 1:
            nh, nw = h // sr_ratio, w // sr_ratio
            xi = x.reshape(Bq, h, w, C).reshape(Bq, nh, sr_ratio, nw, sr_ratio, C)
            pt = xi.transpose(0, 1, 3, 2, 4, 5).reshape(Bq, nh * nw, sr_ratio * sr_ratio * C)
            xs = pt @ params["wsr"] + params["bsr"]
            mu = xs.mean(-1, keepdims=True)
            var = ((xs - mu) ** 2).mean(-1, keepdims=True)
            xkv = (xs - mu) * jax.lax.rsqrt(var + 1e-5) * params["lnsr_g"] + params["lnsr_b"]
        else:
            xkv = x
        kk = xkv @ params["wk"] + params["bk"]
        vv = xkv @ params["wv"] + params["bv"]
        nk = kk.shape[1]
        khh = kk.reshape(Bq, nk, num_heads, dhh).transpose(0, 2, 1, 3)
        vhh = vv.reshape(Bq, nk, num_heads, dhh).transpose(0, 2, 1, 3)
        a = jax.nn.softmax(jnp.einsum("bhqd,bhkd->bhqk", qh, khh) * sc, axis=-1)
        o = jnp.einsum("bhqk,bhkd->bhqd", a, vhh).transpose(0, 2, 1, 3).reshape(Bq, Nq, C)
        return o @ params["wproj"] + params["bproj"], a

    ref_y, ref_attn = reference(params, x, h, w)
    assert jnp.allclose(y, ref_y, atol=1e-4, rtol=1e-3), \
        f"output mismatch, max abs diff {float(jnp.max(jnp.abs(y - ref_y)))}"
    assert jnp.allclose(attn_out["attn"], ref_attn, atol=1e-4, rtol=1e-3), \
        f"attn mismatch, max abs diff {float(jnp.max(jnp.abs(attn_out['attn'] - ref_attn)))}"

    print("KERNEL_OK")
</pallas_src>

<mosaic_0001>
module attributes {stable_mosaic.version = 11 : i64} {
  func.func @_linear_kernel(%arg0: i32, %arg1: i32, %arg2: i32, %arg3: memref<128x32xf32, #tpu.memory_space<vmem>>, %arg4: memref<32x32xf32, #tpu.memory_space<vmem>>, %arg5: memref<1x32xf32, #tpu.memory_space<vmem>>, %arg6: memref<128x32xf32, #tpu.memory_space<vmem>>, %arg7: memref<128x32xf32, #tpu.memory_space<vmem>>) attributes {dimension_semantics = [#tpu.dimension_semantics<parallel>, #tpu.dimension_semantics<parallel>, #tpu.dimension_semantics<arbitrary>], iteration_bounds = array<i64: 1, 1, 1>, scalar_prefetch = 0 : i64, scratch_operands = 1 : i64, tpu.core_type = #tpu.core_type<tc>, window_params = [{transform_indices = @transform_0, window_bounds = array<i64: 128, 32>}, {transform_indices = @transform_1, window_bounds = array<i64: 32, 32>}, {transform_indices = @transform_2, window_bounds = array<i64: 1, 32>}, {transform_indices = @transform_3, window_bounds = array<i64: 128, 32>}]} {
    %c0_i32 = arith.constant 0 : i32
    %0 = arith.cmpi eq, %arg2, %c0_i32 : i32
    %1 = arith.extui %0 : i1 to i32
    %c0_i32_0 = arith.constant 0 : i32
    %2 = arith.cmpi ne, %1, %c0_i32_0 : i32
    scf.if %2 {
      %cst_10 = arith.constant 0.000000e+00 : f32
      %12 = vector.broadcast %cst_10 : f32 to vector<128x32xf32>
      %c0_11 = arith.constant 0 : index
      %c0_12 = arith.constant 0 : index
      %13 = vector.load %arg7[%c0_11, %c0_12] : memref<128x32xf32, #tpu.memory_space<vmem>>, vector<128x32xf32>
      tpu.vector_store %arg7[%c0_11, %c0_12], %12 {strides = array<i32>} : memref<128x32xf32, #tpu.memory_space<vmem>>, vector<128x32xf32>,
    } else {
    }
    %c0 = arith.constant 0 : index
    %c0_1 = arith.constant 0 : index
    %3 = vector.load %arg7[%c0, %c0_1] : memref<128x32xf32, #tpu.memory_space<vmem>>, vector<128x32xf32>
    %c0_2 = arith.constant 0 : index
    %c0_3 = arith.constant 0 : index
    %4 = vector.load %arg3[%c0_2, %c0_3] : memref<128x32xf32, #tpu.memory_space<vmem>>, vector<128x32xf32>
    %c0_4 = arith.constant 0 : index
    %c0_5 = arith.constant 0 : index
    %5 = vector.load %arg4[%c0_4, %c0_5] : memref<32x32xf32, #tpu.memory_space<vmem>>, vector<32x32xf32>
    %cst = arith.constant dense<0.000000e+00> : vector<128x32xf32>
    %6 = tpu.matmul %4, %5, %cst {dimension_numbers = #tpu.dot_dimension_numbers<[1], [0], [0], [1], [0, 0, 1, 1], [], []>} : vector<128x32xf32>, vector<32x32xf32>, vector<128x32xf32> -> vector<128x32xf32>
    %7 = arith.addf %3, %6 : vector<128x32xf32>
    %c0_6 = arith.constant 0 : index
    %c0_7 = arith.constant 0 : index
    %8 = vector.load %arg7[%c0_6, %c0_7] : memref<128x32xf32, #tpu.memory_space<vmem>>, vector<128x32xf32>
    tpu.vector_store %arg7[%c0_6, %c0_7], %7 {strides = array<i32>} : memref<128x32xf32, #tpu.memory_space<vmem>>, vector<128x32xf32>,
    %c0_i32_8 = arith.constant 0 : i32
    %9 = arith.cmpi eq, %arg2, %c0_i32_8 : i32
    %10 = arith.extui %9 : i1 to i32
    %c0_i32_9 = arith.constant 0 : i32
    %11 = arith.cmpi ne, %10, %c0_i32_9 : i32
    scf.if %11 {
      %c0_10 = arith.constant 0 : index
      %c0_11 = arith.constant 0 : index
      %12 = vector.load %arg7[%c0_10, %c0_11] : memref<128x32xf32, #tpu.memory_space<vmem>>, vector<128x32xf32>
      %c0_12 = arith.constant 0 : index
      %c0_13 = arith.constant 0 : index
      %13 = vector.load %arg5[%c0_12, %c0_13] : memref<1x32xf32, #tpu.memory_space<vmem>>, vector<1x32xf32>
      %14 = vector.broadcast %13 : vector<1x32xf32> to vector<128x32xf32>
      %15 = arith.addf %12, %14 : vector<128x32xf32>
      %c0_14 = arith.constant 0 : index
      %c0_15 = arith.constant 0 : index
      %16 = vector.load %arg6[%c0_14, %c0_15] : memref<128x32xf32, #tpu.memory_space<vmem>>, vector<128x32xf32>
      tpu.vector_store %arg6[%c0_14, %c0_15], %15 {strides = array<i32>} : memref<128x32xf32, #tpu.memory_space<vmem>>, vector<128x32xf32>,
    } else {
    }
    return
  }
  func.func @transform_0(%arg0: i32, %arg1: i32, %arg2: i32) -> (i32, i32) {
    %c0_i32 = arith.constant 0 : i32
    return %arg0, %arg2 : i32, i32
  }
  func.func @transform_1(%arg0: i32, %arg1: i32, %arg2: i32) -> (i32, i32) {
    %c0_i32 = arith.constant 0 : i32
    return %arg2, %arg1 : i32, i32
  }
  func.func @transform_2(%arg0: i32, %arg1: i32, %arg2: i32) -> (i32, i32) {
    %c0_i32 = arith.constant 0 : i32
    %c0_i32_0 = arith.constant 0 : i32
    return %c0_i32, %arg1 : i32, i32
  }
  func.func @transform_3(%arg0: i32, %arg1: i32, %arg2: i32) -> (i32, i32) {
    %c0_i32 = arith.constant 0 : i32
    return %arg0, %arg1 : i32, i32
  }
}

module attributes {stable_mosaic.version = 11 : i64} {
  func.func @_linear_kernel(%arg0: i32, %arg1: i32, %arg2: i32, %arg3: memref<32x128xf32, #tpu.memory_space<vmem>>, %arg4: memref<128x32xf32, #tpu.memory_space<vmem>>, %arg5: memref<1x32xf32, #tpu.memory_space<vmem>>, %arg6: memref<32x32xf32, #tpu.memory_space<vmem>>, %arg7: memref<32x32xf32, #tpu.memory_space<vmem>>) attributes {dimension_semantics = [#tpu.dimension_semantics<parallel>, #tpu.dimension_semantics<parallel>, #tpu.dimension_semantics<arbitrary>], iteration_bounds = array<i64: 1, 1, 1>, scalar_prefetch = 0 : i64, scratch_operands = 1 : i64, tpu.core_type = #tpu.core_type<tc>, window_params = [{transform_indices = @transform_0, window_bounds = array<i64: 32, 128>}, {transform_indices = @transform_1, window_bounds = array<i64: 128, 32>}, {transform_indices = @transform_2, window_bounds = array<i64: 1, 32>}, {transform_indices = @transform_3, window_bounds = array<i64: 32, 32>}]} {
    %c0_i32 = arith.constant 0 : i32
    %0 = arith.cmpi eq, %arg2, %c0_i32 : i32
    %1 = arith.extui %0 : i1 to i32
    %c0_i32_0 = arith.constant 0 : i32
    %2 = arith.cmpi ne, %1, %c0_i32_0 : i32
    scf.if %2 {
      %cst_10 = arith.constant 0.000000e+00 : f32
      %12 = vector.broadcast %cst_10 : f32 to vector<32x32xf32>
      %c0_11 = arith.constant 0 : index
      %c0_12 = arith.constant 0 : index
      %13 = vector.load %arg7[%c0_11, %c0_12] : memref<32x32xf32, #tpu.memory_space<vmem>>, vector<32x32xf32>
      tpu.vector_store %arg7[%c0_11, %c0_12], %12 {strides = array<i32>} : memref<32x32xf32, #tpu.memory_space<vmem>>, vector<32x32xf32>,
    } else {
    }
    %c0 = arith.constant 0 : index
    %c0_1 = arith.constant 0 : index
    %3 = vector.load %arg7[%c0, %c0_1] : memref<32x32xf32, #tpu.memory_space<vmem>>, vector<32x32xf32>
    %c0_2 = arith.constant 0 : index
    %c0_3 = arith.constant 0 : index
    %4 = vector.load %arg3[%c0_2, %c0_3] : memref<32x128xf32, #tpu.memory_space<vmem>>, vector<32x128xf32>
    %c0_4 = arith.constant 0 : index
    %c0_5 = arith.constant 0 : index
    %5 = vector.load %arg4[%c0_4, %c0_5] : memref<128x32xf32, #tpu.memory_space<vmem>>, vector<128x32xf32>
    %cst = arith.constant dense<0.000000e+00> : vector<32x32xf32>
    %6 = tpu.matmul %4, %5, %cst {dimension_numbers = #tpu.dot_dimension_numbers<[1], [0], [0], [1], [0, 0, 1, 1], [], []>} : vector<32x128xf32>, vector<128x32xf32>, vector<32x32xf32> -> vector<32x32xf32>
    %7 = arith.addf %3, %6 : vector<32x32xf32>
    %c0_6 = arith.constant 0 : index
    %c0_7 = arith.constant 0 : index
    %8 = vector.load %arg7[%c0_6, %c0_7] : memref<32x32xf32, #tpu.memory_space<vmem>>, vector<32x32xf32>
    tpu.vector_store %arg7[%c0_6, %c0_7], %7 {strides = array<i32>} : memref<32x32xf32, #tpu.memory_space<vmem>>, vector<32x32xf32>,
    %c0_i32_8 = arith.constant 0 : i32
    %9 = arith.cmpi eq, %arg2, %c0_i32_8 : i32
    %10 = arith.extui %9 : i1 to i32
    %c0_i32_9 = arith.constant 0 : i32
    %11 = arith.cmpi ne, %10, %c0_i32_9 : i32
    scf.if %11 {
      %c0_10 = arith.constant 0 : index
      %c0_11 = arith.constant 0 : index
      %12 = vector.load %arg7[%c0_10, %c0_11] : memref<32x32xf32, #tpu.memory_space<vmem>>, vector<32x32xf32>
      %c0_12 = arith.constant 0 : index
      %c0_13 = arith.constant 0 : index
      %13 = vector.load %arg5[%c0_12, %c0_13] : memref<1x32xf32, #tpu.memory_space<vmem>>, vector<1x32xf32>
      %14 = vector.broadcast %13 : vector<1x32xf32> to vector<32x32xf32>
      %15 = arith.addf %12, %14 : vector<32x32xf32>
      %c0_14 = arith.constant 0 : index
      %c0_15 = arith.constant 0 : index
      %16 = vector.load %arg6[%c0_14, %c0_15] : memref<32x32xf32, #tpu.memory_space<vmem>>, vector<32x32xf32>
      tpu.vector_store %arg6[%c0_14, %c0_15], %15 {strides = array<i32>} : memref<32x32xf32, #tpu.memory_space<vmem>>, vector<32x32xf32>,
    } else {
    }
    return
  }
  func.func @transform_0(%arg0: i32, %arg1: i32, %arg2: i32) -> (i32, i32) {
    %c0_i32 = arith.constant 0 : i32
    return %arg0, %arg2 : i32, i32
  }
  func.func @transform_1(%arg0: i32, %arg1: i32, %arg2: i32) -> (i32, i32) {
    %c0_i32 = arith.constant 0 : i32
    return %arg2, %arg1 : i32, i32
  }
  func.func @transform_2(%arg0: i32, %arg1: i32, %arg2: i32) -> (i32, i32) {
    %c0_i32 = arith.constant 0 : i32
    %c0_i32_0 = arith.constant 0 : i32
    return %c0_i32, %arg1 : i32, i32
  }
  func.func @transform_3(%arg0: i32, %arg1: i32, %arg2: i32) -> (i32, i32) {
    %c0_i32 = arith.constant 0 : i32
    return %arg0, %arg1 : i32, i32
  }
}

module attributes {stable_mosaic.version = 11 : i64} {
  func.func @_layernorm_kernel(%arg0: i32, %arg1: memref<32x32xf32, #tpu.memory_space<vmem>>, %arg2: memref<1x32xf32, #tpu.memory_space<vmem>>, %arg3: memref<1x32xf32, #tpu.memory_space<vmem>>, %arg4: memref<32x32xf32, #tpu.memory_space<vmem>>) attributes {dimension_semantics = [#tpu.dimension_semantics<parallel>], iteration_bounds = array<i64: 1>, scalar_prefetch = 0 : i64, scratch_operands = 0 : i64, tpu.core_type = #tpu.core_type<tc>, window_params = [{transform_indices = @transform_0, window_bounds = array<i64: 32, 32>}, {pipeline_mode = #tpu.pipeline_mode<synchronous>, transform_indices = @transform_1, window_bounds = array<i64: 1, 32>}, {pipeline_mode = #tpu.pipeline_mode<synchronous>, transform_indices = @transform_2, window_bounds = array<i64: 1, 32>}, {transform_indices = @transform_3, window_bounds = array<i64: 32, 32>}]} {
    %c0 = arith.constant 0 : index
    %c0_0 = arith.constant 0 : index
    %0 = vector.load %arg1[%c0, %c0_0] : memref<32x32xf32, #tpu.memory_space<vmem>>, vector<32x32xf32>
    %cst = arith.constant dense<0.000000e+00> : vector<32xf32>
    %1 = vector.multi_reduction <add>, %0, %cst [1] : vector<32x32xf32> to vector<32xf32>
    %2 = vector.shape_cast %1 : vector<32xf32> to vector<32x1xf32>
    %cst_1 = arith.constant 3.200000e+01 : f32
    %3 = vector.broadcast %cst_1 : f32 to vector<32x1xf32>
    %4 = arith.divf %2, %3 : vector<32x1xf32>
    %5 = vector.broadcast %4 : vector<32x1xf32> to vector<32x32xf32>
    %6 = arith.subf %0, %5 : vector<32x32xf32>
    %7 = arith.mulf %6, %6 : vector<32x32xf32>
    %cst_2 = arith.constant dense<0.000000e+00> : vector<32xf32>
    %8 = vector.multi_reduction <add>, %7, %cst_2 [1] : vector<32x32xf32> to vector<32xf32>
    %9 = vector.shape_cast %8 : vector<32xf32> to vector<32x1xf32>
    %cst_3 = arith.constant 3.200000e+01 : f32
    %10 = vector.broadcast %cst_3 : f32 to vector<32x1xf32>
    %11 = arith.divf %9, %10 : vector<32x1xf32>
    %cst_4 = arith.constant 9.99999974E-6 : f32
    %12 = vector.broadcast %cst_4 : f32 to vector<32x1xf32>
    %13 = arith.addf %11, %12 : vector<32x1xf32>
    %14 = math.rsqrt %13 : vector<32x1xf32>
    %15 = vector.broadcast %14 : vector<32x1xf32> to vector<32x32xf32>
    %16 = arith.mulf %6, %15 : vector<32x32xf32>
    %c0_5 = arith.constant 0 : index
    %c0_6 = arith.constant 0 : index
    %17 = vector.load %arg2[%c0_5, %c0_6] : memref<1x32xf32, #tpu.memory_space<vmem>>, vector<1x32xf32>
    %18 = vector.broadcast %17 : vector<1x32xf32> to vector<32x32xf32>
    %19 = arith.mulf %16, %18 : vector<32x32xf32>
    %c0_7 = arith.constant 0 : index
    %c0_8 = arith.constant 0 : index
    %20 = vector.load %arg3[%c0_7, %c0_8] : memref<1x32xf32, #tpu.memory_space<vmem>>, vector<1x32xf32>
    %21 = vector.broadcast %20 : vector<1x32xf32> to vector<32x32xf32>
    %22 = arith.addf %19, %21 : vector<32x32xf32>
    %c0_9 = arith.constant 0 : index
    %c0_10 = arith.constant 0 : index
    %23 = vector.load %arg4[%c0_9, %c0_10] : memref<32x32xf32, #tpu.memory_space<vmem>>, vector<32x32xf32>
    tpu.vector_store %arg4[%c0_9, %c0_10], %22 {strides = array<i32>} : memref<32x32xf32, #tpu.memory_space<vmem>>, vector<32x32xf32>,
    return
  }
  func.func @transform_0(%arg0: i32) -> (i32, i32) {
    %c0_i32 = arith.constant 0 : i32
    %c0_i32_0 = arith.constant 0 : i32
    return %arg0, %c0_i32 : i32, i32
  }
  func.func @transform_1(%arg0: i32) -> (i32, i32) {
    %c0_i32 = arith.constant 0 : i32
    %c0_i32_0 = arith.constant 0 : i32
    %c0_i32_1 = arith.constant 0 : i32
    return %c0_i32, %c0_i32_0 : i32, i32
  }
  func.func @transform_2(%arg0: i32) -> (i32, i32) {
    %c0_i32 = arith.constant 0 : i32
    %c0_i32_0 = arith.constant 0 : i32
    %c0_i32_1 = arith.constant 0 : i32
    return %c0_i32, %c0_i32_0 : i32, i32
  }
  func.func @transform_3(%arg0: i32) -> (i32, i32) {
    %c0_i32 = arith.constant 0 : i32
    %c0_i32_0 = arith.constant 0 : i32
    return %arg0, %c0_i32 : i32, i32
  }
}

module attributes {stable_mosaic.version = 11 : i64} {
  func.func @_linear_kv_kernel(%arg0: i32, %arg1: i32, %arg2: i32, %arg3: memref<32x32xf32, #tpu.memory_space<vmem>>, %arg4: memref<32x32xf32, #tpu.memory_space<vmem>>, %arg5: memref<32x32xf32, #tpu.memory_space<vmem>>, %arg6: memref<1x32xf32, #tpu.memory_space<vmem>>, %arg7: memref<1x32xf32, #tpu.memory_space<vmem>>, %arg8: memref<32x32xf32, #tpu.memory_space<vmem>>, %arg9: memref<32x32xf32, #tpu.memory_space<vmem>>, %arg10: memref<32x32xf32, #tpu.memory_space<vmem>>, %arg11: memref<32x32xf32, #tpu.memory_space<vmem>>) attributes {dimension_semantics = [#tpu.dimension_semantics<parallel>, #tpu.dimension_semantics<parallel>, #tpu.dimension_semantics<arbitrary>], iteration_bounds = array<i64: 1, 1, 1>, scalar_prefetch = 0 : i64, scratch_operands = 2 : i64, tpu.core_type = #tpu.core_type<tc>, window_params = [{transform_indices = @transform_0, window_bounds = array<i64: 32, 32>}, {transform_indices = @transform_1, window_bounds = array<i64: 32, 32>}, {transform_indices = @transform_2, window_bounds = array<i64: 32, 32>}, {transform_indices = @transform_3, window_bounds = array<i64: 1, 32>}, {transform_indices = @transform_4, window_bounds = array<i64: 1, 32>}, {transform_indices = @transform_5, window_bounds = array<i64: 32, 32>}, {transform_indices = @transform_6, window_bounds = array<i64: 32, 32>}]} {
    %c0_i32 = arith.constant 0 : i32
    %0 = arith.cmpi eq, %arg2, %c0_i32 : i32
    %1 = arith.extui %0 : i1 to i32
    %c0_i32_0 = arith.constant 0 : i32
    %2 = arith.cmpi ne, %1, %c0_i32_0 : i32
    scf.if %2 {
      %cst_17 = arith.constant 0.000000e+00 : f32
      %17 = vector.broadcast %cst_17 : f32 to vector<32x32xf32>
      %c0_18 = arith.constant 0 : index
      %c0_19 = arith.constant 0 : index
      %18 = vector.load %arg10[%c0_18, %c0_19] : memref<32x32xf32, #tpu.memory_space<vmem>>, vector<32x32xf32>
      tpu.vector_store %arg10[%c0_18, %c0_19], %17 {strides = array<i32>} : memref<32x32xf32, #tpu.memory_space<vmem>>, vector<32x32xf32>,
      %cst_20 = arith.constant 0.000000e+00 : f32
      %19 = vector.broadcast %cst_20 : f32 to vector<32x32xf32>
      %c0_21 = arith.constant 0 : index
      %c0_22 = arith.constant 0 : index
      %20 = vector.load %arg11[%c0_21, %c0_22] : memref<32x32xf32, #tpu.memory_space<vmem>>, vector<32x32xf32>
      tpu.vector_store %arg11[%c0_21, %c0_22], %19 {strides = array<i32>} : memref<32x32xf32, #tpu.memory_space<vmem>>, vector<32x32xf32>,
    } else {
    }
    %c0 = arith.constant 0 : index
    %c0_1 = arith.constant 0 : index
    %3 = vector.load %arg3[%c0, %c0_1] : memref<32x32xf32, #tpu.memory_space<vmem>>, vector<32x32xf32>
    %c0_2 = arith.constant 0 : index
    %c0_3 = arith.constant 0 : index
    %4 = vector.load %arg10[%c0_2, %c0_3] : memref<32x32xf32, #tpu.memory_space<vmem>>, vector<32x32xf32>
    %c0_4 = arith.constant 0 : index
    %c0_5 = arith.constant 0 : index
    %5 = vector.load %arg4[%c0_4, %c0_5] : memref<32x32xf32, #tpu.memory_space<vmem>>, vector<32x32xf32>
    %cst = arith.constant dense<0.000000e+00> : vector<32x32xf32>
    %6 = tpu.matmul %3, %5, %cst {dimension_numbers = #tpu.dot_dimension_numbers<[1], [0], [0], [1], [0, 0, 1, 1], [], []>} : vector<32x32xf32>, vector<32x32xf32>, vector<32x32xf32> -> vector<32x32xf32>
    %7 = arith.addf %4, %6 : vector<32x32xf32>
    %c0_6 = arith.constant 0 : index
    %c0_7 = arith.constant 0 : index
    %8 = vector.load %arg10[%c0_6, %c0_7] : memref<32x32xf32, #tpu.memory_space<vmem>>, vector<32x32xf32>
    tpu.vector_store %arg10[%c0_6, %c0_7], %7 {strides = array<i32>} : memref<32x32xf32, #tpu.memory_space<vmem>>, vector<32x32xf32>,
    %c0_8 = arith.constant 0 : index
    %c0_9 = arith.constant 0 : index
    %9 = vector.load %arg11[%c0_8, %c0_9] : memref<32x32xf32, #tpu.memory_space<vmem>>, vector<32x32xf32>
    %c0_10 = arith.constant 0 : index
    %c0_11 = arith.constant 0 : index
    %10 = vector.load %arg5[%c0_10, %c0_11] : memref<32x32xf32, #tpu.memory_space<vmem>>, vector<32x32xf32>
    %cst_12 = arith.constant dense<0.000000e+00> : vector<32x32xf32>
    %11 = tpu.matmul %3, %10, %cst_12 {dimension_numbers = #tpu.dot_dimension_numbers<[1], [0], [0], [1], [0, 0, 1, 1], [], []>} : vector<32x32xf32>, vector<32x32xf32>, vector<32x32xf32> -> vector<32x32xf32>
    %12 = arith.addf %9, %11 : vector<32x32xf32>
    %c0_13 = arith.constant 0 : index
    %c0_14 = arith.constant 0 : index
    %13 = vector.load %arg11[%c0_13, %c0_14] : memref<32x32xf32, #tpu.memory_space<vmem>>, vector<32x32xf32>
    tpu.vector_store %arg11[%c0_13, %c0_14], %12 {strides = array<i32>} : memref<32x32xf32, #tpu.memory_space<vmem>>, vector<32x32xf32>,
    %c0_i32_15 = arith.constant 0 : i32
    %14 = arith.cmpi eq, %arg2, %c0_i32_15 : i32
    %15 = arith.extui %14 : i1 to i32
    %c0_i32_16 = arith.constant 0 : i32
    %16 = arith.cmpi ne, %15, %c0_i32_16 : i32
    scf.if %16 {
      %c0_17 = arith.constant 0 : index
      %c0_18 = arith.constant 0 : index
      %17 = vector.load %arg10[%c0_17, %c0_18] : memref<32x32xf32, #tpu.memory_space<vmem>>, vector<32x32xf32>
      %c0_19 = arith.constant 0 : index
      %c0_20 = arith.constant 0 : index
      %18 = vector.load %arg6[%c0_19, %c0_20] : memref<1x32xf32, #tpu.memory_space<vmem>>, vector<1x32xf32>
      %19 = vector.broadcast %18 : vector<1x32xf32> to vector<32x32xf32>
      %20 = arith.addf %17, %19 : vector<32x32xf32>
      %c0_21 = arith.constant 0 : index
      %c0_22 = arith.constant 0 : index
      %21 = vector.load %arg8[%c0_21, %c0_22] : memref<32x32xf32, #tpu.memory_space<vmem>>, vector<32x32xf32>
      tpu.vector_store %arg8[%c0_21, %c0_22], %20 {strides = array<i32>} : memref<32x32xf32, #tpu.memory_space<vmem>>, vector<32x32xf32>,
      %c0_23 = arith.constant 0 : index
      %c0_24 = arith.constant 0 : index
      %22 = vector.load %arg11[%c0_23, %c0_24] : memref<32x32xf32, #tpu.memory_space<vmem>>, vector<32x32xf32>
      %c0_25 = arith.constant 0 : index
      %c0_26 = arith.constant 0 : index
      %23 = vector.load %arg7[%c0_25, %c0_26] : memref<1x32xf32, #tpu.memory_space<vmem>>, vector<1x32xf32>
      %24 = vector.broadcast %23 : vector<1x32xf32> to vector<32x32xf32>
      %25 = arith.addf %22, %24 : vector<32x32xf32>
      %c0_27 = arith.constant 0 : index
      %c0_28 = arith.constant 0 : index
      %26 = vector.load %arg9[%c0_27, %c0_28] : memref<32x32xf32, #tpu.memory_space<vmem>>, vector<32x32xf32>
      tpu.vector_store %arg9[%c0_27, %c0_28], %25 {strides = array<i32>} : memref<32x32xf32, #tpu.memory_space<vmem>>, vector<32x32xf32>,
    } else {
    }
    return
  }
  func.func @transform_0(%arg0: i32, %arg1: i32, %arg2: i32) -> (i32, i32) {
    %c0_i32 = arith.constant 0 : i32
    return %arg0, %arg2 : i32, i32
  }
  func.func @transform_1(%arg0: i32, %arg1: i32, %arg2: i32) -> (i32, i32) {
    %c0_i32 = arith.constant 0 : i32
    return %arg2, %arg1 : i32, i32
  }
  func.func @transform_2(%arg0: i32, %arg1: i32, %arg2: i32) -> (i32, i32) {
    %c0_i32 = arith.constant 0 : i32
    return %arg2, %arg1 : i32, i32
  }
  func.func @transform_3(%arg0: i32, %arg1: i32, %arg2: i32) -> (i32, i32) {
    %c0_i32 = arith.constant 0 : i32
    %c0_i32_0 = arith.constant 0 : i32
    return %c0_i32, %arg1 : i32, i32
  }
  func.func @transform_4(%arg0: i32, %arg1: i32, %arg2: i32) -> (i32, i32) {
    %c0_i32 = arith.constant 0 : i32
    %c0_i32_0 = arith.constant 0 : i32
    return %c0_i32, %arg1 : i32, i32
  }
  func.func @transform_5(%arg0: i32, %arg1: i32, %arg2: i32) -> (i32, i32) {
    %c0_i32 = arith.constant 0 : i32
    return %arg0, %arg1 : i32, i32
  }
  func.func @transform_6(%arg0: i32, %arg1: i32, %arg2: i32) -> (i32, i32) {
    %c0_i32 = arith.constant 0 : i32
    return %arg0, %arg1 : i32, i32
  }
}

module attributes {stable_mosaic.version = 11 : i64} {
  func.func @_attn_proj_kernel(%arg0: i32, %arg1: i32, %arg2: memref<1x2x64x16xf32, #tpu.memory_space<vmem>>, %arg3: memref<1x2x16x16xf32, #tpu.memory_space<vmem>>, %arg4: memref<1x2x16x16xf32, #tpu.memory_space<vmem>>, %arg5: memref<32x32xf32, #tpu.memory_space<vmem>>, %arg6: memref<1x32xf32, #tpu.memory_space<vmem>>, %arg7: memref<1x64x32xf32, #tpu.memory_space<vmem>>, %arg8: memref<1x2x64x16xf32, #tpu.memory_space<vmem>>, %arg9: memref<64x32xf32, #tpu.memory_space<vmem>>) attributes {dimension_semantics = [#tpu.dimension_semantics<parallel>, #tpu.dimension_semantics<parallel>], iteration_bounds = array<i64: 2, 1>, scalar_prefetch = 0 : i64, scratch_operands = 1 : i64, tpu.core_type = #tpu.core_type<tc>, window_params = [{transform_indices = @transform_0, window_bounds = array<i64: 1, 2, 64, 16>}, {transform_indices = @transform_1, window_bounds = array<i64: 1, 2, 16, 16>}, {transform_indices = @transform_2, window_bounds = array<i64: 1, 2, 16, 16>}, {pipeline_mode = #tpu.pipeline_mode<synchronous>, transform_indices = @transform_3, window_bounds = array<i64: 32, 32>}, {pipeline_mode = #tpu.pipeline_mode<synchronous>, transform_indices = @transform_4, window_bounds = array<i64: 1, 32>}, {transform_indices = @transform_5, window_bounds = array<i64: 1, 64, 32>}, {transform_indices = @transform_6, window_bounds = array<i64: 1, 2, 64, 16>}]} {
    %c0 = arith.constant 0 : index
    %c0_0 = arith.constant 0 : index
    %c0_1 = arith.constant 0 : index
    %c0_2 = arith.constant 0 : index
    %0 = vector.load %arg2[%c0, %c0_0, %c0_1, %c0_2] : memref<1x2x64x16xf32, #tpu.memory_space<vmem>>, vector<1x2x64x16xf32>
    %1 = vector.shape_cast %0 : vector<1x2x64x16xf32> to vector<2x64x16xf32>
    %cst = arith.constant 2.500000e-01 : f32
    %2 = vector.broadcast %cst : f32 to vector<2x64x16xf32>
    %3 = arith.mulf %1, %2 : vector<2x64x16xf32>
    %c0_3 = arith.constant 0 : index
    %c0_4 = arith.constant 0 : index
    %c0_5 = arith.constant 0 : index
    %c0_6 = arith.constant 0 : index
    %4 = vector.load %arg3[%c0_3, %c0_4, %c0_5, %c0_6] : memref<1x2x16x16xf32, #tpu.memory_space<vmem>>, vector<1x2x16x16xf32>
    %5 = vector.shape_cast %4 : vector<1x2x16x16xf32> to vector<2x16x16xf32>
    %c0_7 = arith.constant 0 : index
    %c0_8 = arith.constant 0 : index
    %c0_9 = arith.constant 0 : index
    %c0_10 = arith.constant 0 : index
    %6 = vector.load %arg4[%c0_7, %c0_8, %c0_9, %c0_10] : memref<1x2x16x16xf32, #tpu.memory_space<vmem>>, vector<1x2x16x16xf32>
    %7 = vector.shape_cast %6 : vector<1x2x16x16xf32> to vector<2x16x16xf32>
    %cst_11 = arith.constant dense<0.000000e+00> : vector<2x64x16xf32>
    %8 = tpu.matmul %3, %5, %cst_11 {dimension_numbers = #tpu.dot_dimension_numbers<[2], [2], [1], [1], [0, 0, 0, 1, 1, 1], [0], [0]>} : vector<2x64x16xf32>, vector<2x16x16xf32>, vector<2x64x16xf32> -> vector<2x64x16xf32>
    %cst_12 = arith.constant dense<0xFF800000> : vector<2x64xf32>
    %9 = vector.multi_reduction <maximumf>, %8, %cst_12 [2] : vector<2x64x16xf32> to vector<2x64xf32>
    %10 = vector.shape_cast %9 : vector<2x64xf32> to vector<2x64x1xf32>
    %11 = vector.broadcast %10 : vector<2x64x1xf32> to vector<2x64x16xf32>
    %12 = arith.subf %8, %11 : vector<2x64x16xf32>
    %13 = math.exp %12 : vector<2x64x16xf32>
    %cst_13 = arith.constant dense<0.000000e+00> : vector<2x64xf32>
    %14 = vector.multi_reduction <add>, %13, %cst_13 [2] : vector<2x64x16xf32> to vector<2x64xf32>
    %15 = vector.shape_cast %14 : vector<2x64xf32> to vector<2x64x1xf32>
    %16 = tpu.reciprocal %15 : vector<2x64x1xf32> -> vector<2x64x1xf32>
    %17 = vector.broadcast %16 : vector<2x64x1xf32> to vector<2x64x16xf32>
    %18 = arith.mulf %13, %17 : vector<2x64x16xf32>
    %c0_14 = arith.constant 0 : index
    %c0_15 = arith.constant 0 : index
    %c0_16 = arith.constant 0 : index
    %c0_17 = arith.constant 0 : index
    %19 = vector.load %arg8[%c0_14, %c0_15, %c0_16, %c0_17] : memref<1x2x64x16xf32, #tpu.memory_space<vmem>>, vector<1x2x64x16xf32>
    %20 = vector.shape_cast %19 : vector<1x2x64x16xf32> to vector<2x64x16xf32>
    %21 = vector.shape_cast %18 : vector<2x64x16xf32> to vector<1x2x64x16xf32>
    tpu.vector_store %arg8[%c0_14, %c0_15, %c0_16, %c0_17], %21 {strides = array<i32>} : memref<1x2x64x16xf32, #tpu.memory_space<vmem>>, vector<1x2x64x16xf32>,
    %cst_18 = arith.constant dense<0.000000e+00> : vector<2x64x16xf32>
    %22 = tpu.matmul %18, %7, %cst_18 {dimension_numbers = #tpu.dot_dimension_numbers<[2], [1], [1], [2], [0, 0, 0, 1, 1, 2], [0], [0]>} : vector<2x64x16xf32>, vector<2x16x16xf32>, vector<2x64x16xf32> -> vector<2x64x16xf32>
    %23 = vector.extract_strided_slice %22 {offsets = [0, 0, 0], sizes = [1, 64, 16], strides = [1, 1, 1]} : vector<2x64x16xf32> to vector<1x64x16xf32>
    %24 = vector.shape_cast %23 : vector<1x64x16xf32> to vector<64x16xf32>
    %c0_19 = arith.constant 0 : index
    %c0_20 = arith.constant 0 : index
    %25 = vector.load %arg9[%c0_19, %c0_20] : memref<64x32xf32, #tpu.memory_space<vmem>>, vector<64x16xf32>
    tpu.vector_store %arg9[%c0_19, %c0_20], %24 {strides = array<i32>} : memref<64x32xf32, #tpu.memory_space<vmem>>, vector<64x16xf32>,
    %26 = vector.extract_strided_slice %22 {offsets = [1, 0, 0], sizes = [1, 64, 16], strides = [1, 1, 1]} : vector<2x64x16xf32> to vector<1x64x16xf32>
    %27 = vector.shape_cast %26 : vector<1x64x16xf32> to vector<64x16xf32>
    %c0_21 = arith.constant 0 : index
    %c16 = arith.constant 16 : index
    %28 = vector.load %arg9[%c0_21, %c16] : memref<64x32xf32, #tpu.memory_space<vmem>>, vector<64x16xf32>
    tpu.vector_store %arg9[%c0_21, %c16], %27 {strides = array<i32>} : memref<64x32xf32, #tpu.memory_space<vmem>>, vector<64x16xf32>,
    %c0_22 = arith.constant 0 : index
    %c0_23 = arith.constant 0 : index
    %29 = vector.load %arg9[%c0_22, %c0_23] : memref<64x32xf32, #tpu.memory_space<vmem>>, vector<64x32xf32>
    %c0_24 = arith.constant 0 : index
    %c0_25 = arith.constant 0 : index
    %30 = vector.load %arg5[%c0_24, %c0_25] : memref<32x32xf32, #tpu.memory_space<vmem>>, vector<32x32xf32>
    %cst_26 = arith.constant dense<0.000000e+00> : vector<64x32xf32>
    %31 = tpu.matmul %29, %30, %cst_26 {dimension_numbers = #tpu.dot_dimension_numbers<[1], [0], [0], [1], [0, 0, 1, 1], [], []>} : vector<64x32xf32>, vector<32x32xf32>, vector<64x32xf32> -> vector<64x32xf32>
    %c0_27 = arith.constant 0 : index
    %c0_28 = arith.constant 0 : index
    %32 = vector.load %arg6[%c0_27, %c0_28] : memref<1x32xf32, #tpu.memory_space<vmem>>, vector<1x32xf32>
    %33 = vector.broadcast %32 : vector<1x32xf32> to vector<64x32xf32>
    %34 = arith.addf %31, %33 : vector<64x32xf32>
    %c0_29 = arith.constant 0 : index
    %c0_30 = arith.constant 0 : index
    %c0_31 = arith.constant 0 : index
    %35 = vector.load %arg7[%c0_29, %c0_30, %c0_31] : memref<1x64x32xf32, #tpu.memory_space<vmem>>, vector<1x64x32xf32>
    %36 = vector.shape_cast %35 : vector<1x64x32xf32> to vector<64x32xf32>
    %37 = vector.shape_cast %34 : vector<64x32xf32> to vector<1x64x32xf32>
    tpu.vector_store %arg7[%c0_29, %c0_30, %c0_31], %37 {strides = array<i32>} : memref<1x64x32xf32, #tpu.memory_space<vmem>>, vector<1x64x32xf32>,
    return
  }
  func.func @transform_0(%arg0: i32, %arg1: i32) -> (i32, i32, i32, i32) {
    %c0_i32 = arith.constant 0 : i32
    %c0_i32_0 = arith.constant 0 : i32
    %c0_i32_1 = arith.constant 0 : i32
    return %arg0, %c0_i32, %arg1, %c0_i32_0 : i32, i32, i32, i32
  }
  func.func @transform_1(%arg0: i32, %arg1: i32) -> (i32, i32, i32, i32) {
    %c0_i32 = arith.constant 0 : i32
    %c0_i32_0 = arith.constant 0 : i32
    %c0_i32_1 = arith.constant 0 : i32
    %c0_i32_2 = arith.constant 0 : i32
    return %arg0, %c0_i32, %c0_i32_0, %c0_i32_1 : i32, i32, i32, i32
  }
  func.func @transform_2(%arg0: i32, %arg1: i32) -> (i32, i32, i32, i32) {
    %c0_i32 = arith.constant 0 : i32
    %c0_i32_0 = arith.constant 0 : i32
    %c0_i32_1 = arith.constant 0 : i32
    %c0_i32_2 = arith.constant 0 : i32
    return %arg0, %c0_i32, %c0_i32_0, %c0_i32_1 : i32, i32, i32, i32
  }
  func.func @transform_3(%arg0: i32, %arg1: i32) -> (i32, i32) {
    %c0_i32 = arith.constant 0 : i32
    %c0_i32_0 = arith.constant 0 : i32
    %c0_i32_1 = arith.constant 0 : i32
    return %c0_i32, %c0_i32_0 : i32, i32
  }
  func.func @transform_4(%arg0: i32, %arg1: i32) -> (i32, i32) {
    %c0_i32 = arith.constant 0 : i32
    %c0_i32_0 = arith.constant 0 : i32
    %c0_i32_1 = arith.constant 0 : i32
    return %c0_i32, %c0_i32_0 : i32, i32
  }
  func.func @transform_5(%arg0: i32, %arg1: i32) -> (i32, i32, i32) {
    %c0_i32 = arith.constant 0 : i32
    %c0_i32_0 = arith.constant 0 : i32
    return %arg0, %arg1, %c0_i32 : i32, i32, i32
  }
  func.func @transform_6(%arg0: i32, %arg1: i32) -> (i32, i32, i32, i32) {
    %c0_i32 = arith.constant 0 : i32
    %c0_i32_0 = arith.constant 0 : i32
    %c0_i32_1 = arith.constant 0 : i32
    return %arg0, %c0_i32, %arg1, %c0_i32_0 : i32, i32, i32, i32
  }
}

</mosaic_0001>

<bundles_post_ra>
// kernel: efficient_self_attention_forward.5
= control target key start
LH: loop header
LB: loop body
LE: loop exit
PB: predicated region body
PF: predicated region fallthrough
CT: control target
= control target key end

     0   :  { %vm18_vm0 = vcmask 261120   ;;  %v306_v3 = vmov 0.0   ;;  %s520_s1 = inlined_call_operand.vmem [shape: f32[32,32], index: 1, kind: input, shape index: {}]   ;;  %s521_s0 = inlined_call_operand.vmem [shape: f32[128,32], index: 0, kind: input, shape index: {}]   ;;  %s522_s2 = inlined_call_operand.vmem [shape: f32[1,32], index: 2, kind: input, shape index: {}]   ;;  %s523_s3 = inlined_call_operand.vmem [shape: f32[128,32], index: 3, kind: output, shape index: {}]  }
   0x1   :  { %v70_v0 = vld [vmem:[%s520_s1 + $0x18] sm:$0xff]  ;;  %v69_v1 = vld [vmem:[%s520_s1 + $0x10] sm:$0xff]  ;;  %v68_v2 = vld [vmem:[%s520_s1 + $0x8] sm:$0xff]  ;;  %19 = vst.msk [vmem:[#allocation2] sm:$0xff] %vm18_vm0, %v306_v3 }
   0x2   :  { %293 = vmatpush.msra.mxu2 %v70_v0  ;;  %294 = vmatpush.msra.mxu3 %v70_v0  ;;  %v67_v4 = vld [vmem:[%s520_s1] sm:$0xff]  ;;  %20 = vst.msk [vmem:[#allocation2 + $0x8] sm:$0xff] %vm18_vm0, %v306_v3  ;;  %v60_v9 = vld [vmem:[%s521_s0 + $0x48] sm:$0xff]  ;;  %v61_v13 = vld [vmem:[%s521_s0 + $0x50] sm:$0xff] }
   0x3   :  { %132 = vmatpush.msra.mxu0 %v70_v0  ;;  %292 = vmatpush.msra.mxu1 %v70_v0  ;;  %v59_v5 = vld [vmem:[%s521_s0 + $0x40] sm:$0xff]  ;;  %21 = vst.msk [vmem:[#allocation2 + $0x10] sm:$0xff] %vm18_vm0, %v306_v3  ;;  %v64_v10 = vld [vmem:[%s521_s0 + $0x68] sm:$0xff]  ;;  %v65_v14 = vld [vmem:[%s521_s0 + $0x70] sm:$0xff] }
   0x4   :  { %296 = vmatpush.msra.mxu2 %v69_v1  ;;  %297 = vmatpush.msra.mxu3 %v69_v1  ;;  %v63_v6 = vld [vmem:[%s521_s0 + $0x60] sm:$0xff]  ;;  %22 = vst.msk [vmem:[#allocation2 + $0x18] sm:$0xff] %vm18_vm0, %v306_v3  ;;  %v52_v11 = vld [vmem:[%s521_s0 + $0x8] sm:$0xff]  ;;  %v53_v15 = vld [vmem:[%s521_s0 + $0x10] sm:$0xff] }
   0x5   :  { %133 = vmatpush.msra.mxu0 %v69_v1  ;;  %295 = vmatpush.msra.mxu1 %v69_v1  ;;  %v51_v7 = vld [vmem:[%s521_s0] sm:$0xff]  ;;  %23 = vst.msk [vmem:[#allocation2 + $0x20] sm:$0xff] %vm18_vm0, %v306_v3  ;;  %v56_v12 = vld [vmem:[%s521_s0 + $0x28] sm:$0xff]  ;;  %v57_v16 = vld [vmem:[%s521_s0 + $0x30] sm:$0xff] }
   0x6   :  { %299 = vmatpush.msra.mxu2 %v68_v2  ;;  %300 = vmatpush.msra.mxu3 %v68_v2  ;;  %v55_v8 = vld [vmem:[%s521_s0 + $0x20] sm:$0xff]  ;;  %24 = vst.msk [vmem:[#allocation2 + $0x28] sm:$0xff] %vm18_vm0, %v306_v3  ;;  %v62_v17 = vld [vmem:[%s521_s0 + $0x58] sm:$0xff] }
   0x7   :  { %134 = vmatpush.msra.mxu0 %v68_v2  ;;  %298 = vmatpush.msra.mxu1 %v68_v2  ;;  %25 = vst.msk [vmem:[#allocation2 + $0x30] sm:$0xff] %vm18_vm0, %v306_v3  ;;  %v66_v18 = vld [vmem:[%s521_s0 + $0x78] sm:$0xff]  ;;  %v424_v35 = vld [vmem:[%s522_s2] ss:$0 sm:$0xff] }
   0x8   :  { %302 = vmatpush.msra.mxu2 %v67_v4  ;;  %303 = vmatpush.msra.mxu3 %v67_v4  ;;  %26 = vst.msk [vmem:[#allocation2 + $0x38] sm:$0xff] %vm18_vm0, %v306_v3  ;;  %v54_v19 = vld [vmem:[%s521_s0 + $0x18] sm:$0xff]  ;;  %v35_v21 = vld [vmem:[#allocation2] sm:$0xff] }
   0x9   :  { %284 = vmatmul.msk.f32.vlgmr.msra.gmra.mxu2 %vm18_vm0, %v59_v5  ;;  %288 = vmatmul.msk.f32.vlgmr.msra.gmra.mxu3 %vm18_vm0, %v63_v6  ;;  %27 = vst.msk [vmem:[#allocation2 + $0x40] sm:$0xff] %vm18_vm0, %v306_v3  ;;  %v58_v20 = vld [vmem:[%s521_s0 + $0x38] sm:$0xff]  ;;  %v36_v33 = vld [vmem:[#allocation2 + $0x8] sm:$0xff] }
   0xa   :  { %135 = vmatpush.msra.mxu0 %v67_v4  ;;  %301 = vmatpush.msra.mxu1 %v67_v4  ;;  %28 = vst.msk [vmem:[#allocation2 + $0x48] sm:$0xff] %vm18_vm0, %v306_v3  ;;  %v37_v51 = vld [vmem:[#allocation2 + $0x10] sm:$0xff] }
   0xb   :  { %276 = vmatmul.msk.f32.vlgmr.msra.gmra.mxu0 %vm18_vm0, %v51_v7  ;;  %280 = vmatmul.msk.f32.vlgmr.msra.gmra.mxu1 %vm18_vm0, %v55_v8  ;;  %29 = vst.msk [vmem:[#allocation2 + $0x50] sm:$0xff] %vm18_vm0, %v306_v3  ;;  %v38_v7 = vld [vmem:[#allocation2 + $0x18] sm:$0xff] }
   0xc   :  { %30 = vst.msk [vmem:[#allocation2 + $0x58] sm:$0xff] %vm18_vm0, %v306_v3  ;;  %v39_v22 = vld [vmem:[#allocation2 + $0x20] sm:$0xff] }
   0xd   :  { %31 = vst.msk [vmem:[#allocation2 + $0x60] sm:$0xff] %vm18_vm0, %v306_v3  ;;  %v40_v34 = vld [vmem:[#allocation2 + $0x28] sm:$0xff] }
   0xe   :  { %32 = vst.msk [vmem:[#allocation2 + $0x68] sm:$0xff] %vm18_vm0, %v306_v3  ;;  %v41_v52 = vld [vmem:[#allocation2 + $0x30] sm:$0xff] }
   0xf   :  { %33 = vst.msk [vmem:[#allocation2 + $0x70] sm:$0xff] %vm18_vm0, %v306_v3  ;;  %v42_v8 = vld [vmem:[#allocation2 + $0x38] sm:$0xff] }
  0x10   :  { %34 = vst.msk [vmem:[#allocation2 + $0x78] sm:$0xff] %vm18_vm0, %v306_v3  ;;  %v43_v27 = vld [vmem:[#allocation2 + $0x40] sm:$0xff] }
  0x11   :  { %285 = vmatmul.msk.f32.gmra.mxu2 %vm18_vm0, %v60_v9  ;;  %289 = vmatmul.msk.f32.gmra.mxu3 %vm18_vm0, %v64_v10  ;;  %v44_v41 = vld [vmem:[#allocation2 + $0x48] sm:$0xff] }
  0x12   :  { %v45_v61 = vld [vmem:[#allocation2 + $0x50] sm:$0xff] }
  0x13   :  { %277 = vmatmul.msk.f32.gmra.mxu0 %vm18_vm0, %v52_v11  ;;  %281 = vmatmul.msk.f32.gmra.mxu1 %vm18_vm0, %v56_v12 }
  0x14   :  { %v47_v28 = vld [vmem:[#allocation2 + $0x60] sm:$0xff] }
  0x15   :  { %v48_v42 = vld [vmem:[#allocation2 + $0x68] sm:$0xff] }
  0x16   :  { %v49_v62 = vld [vmem:[#allocation2 + $0x70] sm:$0xff] }
  0x19   :  { %286 = vmatmul.msk.f32.gmra.mxu2 %vm18_vm0, %v61_v13  ;;  %290 = vmatmul.msk.f32.gmra.mxu3 %vm18_vm0, %v65_v14 }
  0x1b   :  { %278 = vmatmul.msk.f32.gmra.mxu0 %vm18_vm0, %v53_v15  ;;  %282 = vmatmul.msk.f32.gmra.mxu1 %vm18_vm0, %v57_v16 }
  0x21   :  { %287 = vmatmul.msk.f32.gmra.mxu2 %vm18_vm0, %v62_v17  ;;  %291 = vmatmul.msk.f32.gmra.mxu3 %vm18_vm0, %v66_v18  ;;  %v46_v17 = vld [vmem:[#allocation2 + $0x58] sm:$0xff] }
  0x22   :  { %v50_v18 = vld [vmem:[#allocation2 + $0x78] sm:$0xff] }
  0x23   :  { %279 = vmatmul.msk.f32.gmra.mxu0 %vm18_vm0, %v54_v19  ;;  %283 = vmatmul.msk.f32.gmra.mxu1 %vm18_vm0, %v58_v20 }
  0x88   :  { %v137_v23 = vpop.f32.mrf.mxu0  ;;  %v149_v24 = vpop.f32.mrf.mxu1 }
  0x89   :  { %v185_v25 = vadd.f32 %v137_v23, %v35_v21  ;;  %v189_v26 = vadd.f32 %v149_v24, %v39_v22 }
  0x8b   :  { %201 = vst.msk [vmem:[#allocation2] sm:$0xff] %vm18_vm0, %v185_v25 }
  0x8c   :  { %205 = vst.msk [vmem:[#allocation2 + $0x20] sm:$0xff] %vm18_vm0, %v189_v26  ;;  %v161_v29 = vpop.f32.mrf.mxu2  ;;  %v173_v30 = vpop.f32.mrf.mxu3 }
  0x8d   :  { %v193_v31 = vadd.f32 %v161_v29, %v43_v27  ;;  %v197_v32 = vadd.f32 %v173_v30, %v47_v28 }
  0x8f   :  { %209 = vst.msk [vmem:[#allocation2 + $0x40] sm:$0xff] %vm18_vm0, %v193_v31 }
  0x90   :  { %213 = vst.msk [vmem:[#allocation2 + $0x60] sm:$0xff] %vm18_vm0, %v197_v32  ;;  %v140_v36 = vpop.f32.mrf.mxu0  ;;  %v152_v37 = vpop.f32.mrf.mxu1 }
  0x91   :  { %v186_v38 = vadd.f32 %v140_v36, %v36_v33  ;;  %v190_v39 = vadd.f32 %v152_v37, %v40_v34 }
  0x92   :  { %v220_v40 = vld [vmem:[#allocation2] sm:$0xff] }
  0x93   :  { %v240_v43 = vadd.f32 %v424_v35, %v220_v40  ;;  %v224_v44 = vld [vmem:[#allocation2 + $0x20] sm:$0xff]  ;;  %202 = vst.msk [vmem:[#allocation2 + $0x8] sm:$0xff] %vm18_vm0, %v186_v38 }
  0x94   :  { %v244_v45 = vadd.f32 %v424_v35, %v224_v44  ;;  %206 = vst.msk [vmem:[#allocation2 + $0x28] sm:$0xff] %vm18_vm0, %v190_v39  ;;  %v164_v46 = vpop.f32.mrf.mxu2  ;;  %v176_v47 = vpop.f32.mrf.mxu3 }
  0x95   :  { %256 = vst.msk [vmem:[%s523_s3] sm:$0xff] %vm18_vm0, %v240_v43  ;;  %v194_v48 = vadd.f32 %v164_v46, %v44_v41  ;;  %v198_v49 = vadd.f32 %v176_v47, %v48_v42 }
  0x96   :  { %260 = vst.msk [vmem:[%s523_s3 + $0x20] sm:$0xff] %vm18_vm0, %v244_v45  ;;  %v228_v50 = vld [vmem:[#allocation2 + $0x40] sm:$0xff] }
  0x97   :  { %v248_v53 = vadd.f32 %v424_v35, %v228_v50  ;;  %v232_v54 = vld [vmem:[#allocation2 + $0x60] sm:$0xff]  ;;  %210 = vst.msk [vmem:[#allocation2 + $0x48] sm:$0xff] %vm18_vm0, %v194_v48 }
  0x98   :  { %v252_v55 = vadd.f32 %v424_v35, %v232_v54  ;;  %214 = vst.msk [vmem:[#allocation2 + $0x68] sm:$0xff] %vm18_vm0, %v198_v49  ;;  %v143_v56 = vpop.f32.mrf.mxu0  ;;  %v155_v57 = vpop.f32.mrf.mxu1 }
  0x99   :  { %264 = vst.msk [vmem:[%s523_s3 + $0x40] sm:$0xff] %vm18_vm0, %v248_v53  ;;  %v187_v58 = vadd.f32 %v143_v56, %v37_v51  ;;  %v191_v59 = vadd.f32 %v155_v57, %v41_v52 }
  0x9a   :  { %268 = vst.msk [vmem:[%s523_s3 + $0x60] sm:$0xff] %vm18_vm0, %v252_v55  ;;  %v221_v60 = vld [vmem:[#allocation2 + $0x8] sm:$0xff] }
  0x9b   :  { %v241_v63 = vadd.f32 %v424_v35, %v221_v60  ;;  %v225_v0 = vld [vmem:[#allocation2 + $0x28] sm:$0xff]  ;;  %203 = vst.msk [vmem:[#allocation2 + $0x10] sm:$0xff] %vm18_vm0, %v187_v58 }
  0x9c   :  { %v245_v1 = vadd.f32 %v424_v35, %v225_v0  ;;  %207 = vst.msk [vmem:[#allocation2 + $0x30] sm:$0xff] %vm18_vm0, %v191_v59  ;;  %v167_v2 = vpop.f32.mrf.mxu2  ;;  %v179_v3 = vpop.f32.mrf.mxu3 }
  0x9d   :  { %257 = vst.msk [vmem:[%s523_s3 + $0x8] sm:$0xff] %vm18_vm0, %v241_v63  ;;  %v195_v4 = vadd.f32 %v167_v2, %v45_v61  ;;  %v199_v5 = vadd.f32 %v179_v3, %v49_v62 }
  0x9e   :  { %261 = vst.msk [vmem:[%s523_s3 + $0x28] sm:$0xff] %vm18_vm0, %v245_v1  ;;  %v229_v6 = vld [vmem:[#allocation2 + $0x48] sm:$0xff] }
  0x9f   :  { %v249_v9 = vadd.f32 %v424_v35, %v229_v6  ;;  %v233_v10 = vld [vmem:[#allocation2 + $0x68] sm:$0xff]  ;;  %211 = vst.msk [vmem:[#allocation2 + $0x50] sm:$0xff] %vm18_vm0, %v195_v4 }
  0xa0   :  { %v253_v11 = vadd.f32 %v424_v35, %v233_v10  ;;  %215 = vst.msk [vmem:[#allocation2 + $0x70] sm:$0xff] %vm18_vm0, %v199_v5  ;;  %v146_v12 = vpop.f32.mrf.mxu0  ;;  %v158_v13 = vpop.f32.mrf.mxu1 }
  0xa1   :  { %265 = vst.msk [vmem:[%s523_s3 + $0x48] sm:$0xff] %vm18_vm0, %v249_v9  ;;  %v188_v14 = vadd.f32 %v146_v12, %v38_v7  ;;  %v192_v15 = vadd.f32 %v158_v13, %v42_v8 }
  0xa2   :  { %269 = vst.msk [vmem:[%s523_s3 + $0x68] sm:$0xff] %vm18_vm0, %v253_v11  ;;  %v222_v16 = vld [vmem:[#allocation2 + $0x10] sm:$0xff] }
  0xa3   :  { %v242_v19 = vadd.f32 %v424_v35, %v222_v16  ;;  %v226_v20 = vld [vmem:[#allocation2 + $0x30] sm:$0xff]  ;;  %204 = vst.msk [vmem:[#allocation2 + $0x18] sm:$0xff] %vm18_vm0, %v188_v14 }
  0xa4   :  { %v246_v21 = vadd.f32 %v424_v35, %v226_v20  ;;  %208 = vst.msk [vmem:[#allocation2 + $0x38] sm:$0xff] %vm18_vm0, %v192_v15  ;;  %v170_v22 = vpop.f32.mrf.mxu2  ;;  %v182_v23 = vpop.f32.mrf.mxu3 }
  0xa5   :  { %258 = vst.msk [vmem:[%s523_s3 + $0x10] sm:$0xff] %vm18_vm0, %v242_v19  ;;  %v196_v24 = vadd.f32 %v170_v22, %v46_v17  ;;  %v200_v25 = vadd.f32 %v182_v23, %v50_v18 }
  0xa6   :  { %262 = vst.msk [vmem:[%s523_s3 + $0x30] sm:$0xff] %vm18_vm0, %v246_v21  ;;  %v230_v26 = vld [vmem:[#allocation2 + $0x50] sm:$0xff] }
  0xa7   :  { %v250_v27 = vadd.f32 %v424_v35, %v230_v26  ;;  %v234_v28 = vld [vmem:[#allocation2 + $0x70] sm:$0xff]  ;;  %212 = vst.msk [vmem:[#allocation2 + $0x58] sm:$0xff] %vm18_vm0, %v196_v24 }
  0xa8   :  { %v254_v29 = vadd.f32 %v424_v35, %v234_v28  ;;  %216 = vst.msk [vmem:[#allocation2 + $0x78] sm:$0xff] %vm18_vm0, %v200_v25 }
  0xa9   :  { %266 = vst.msk [vmem:[%s523_s3 + $0x50] sm:$0xff] %vm18_vm0, %v250_v27 }
  0xaa   :  { %270 = vst.msk [vmem:[%s523_s3 + $0x70] sm:$0xff] %vm18_vm0, %v254_v29  ;;  %v223_v30 = vld [vmem:[#allocation2 + $0x18] sm:$0xff] }
  0xab   :  { %v243_v31 = vadd.f32 %v424_v35, %v223_v30  ;;  %v227_v32 = vld [vmem:[#allocation2 + $0x38] sm:$0xff] }
  0xac   :  { %v247_v33 = vadd.f32 %v424_v35, %v227_v32 }
  0xad   :  { %259 = vst.msk [vmem:[%s523_s3 + $0x18] sm:$0xff] %vm18_vm0, %v243_v31 }
  0xae   :  { %263 = vst.msk [vmem:[%s523_s3 + $0x38] sm:$0xff] %vm18_vm0, %v247_v33  ;;  %v231_v34 = vld [vmem:[#allocation2 + $0x58] sm:$0xff] }
  0xaf   :  { %v251_v36 = vadd.f32 %v424_v35, %v231_v34  ;;  %v235_v37 = vld [vmem:[#allocation2 + $0x78] sm:$0xff] }
  0xb0   :  { %v255_v38 = vadd.f32 %v424_v35, %v235_v37 }
  0xb1   :  { %267 = vst.msk [vmem:[%s523_s3 + $0x58] sm:$0xff] %vm18_vm0, %v251_v36 }
  0xb2   :  { %271 = vst.msk [vmem:[%s523_s3 + $0x78] sm:$0xff] %vm18_vm0, %v255_v38 }

// kernel: efficient_self_attention_forward.6
= control target key start
LH: loop header
LB: loop body
LE: loop exit
PB: predicated region body
PF: predicated region fallthrough
CT: control target
= control target key end

     0   :  { %vm18_vm0 = vcmask 261120   ;;  %v158_v3 = vmov 0.0   ;;  %s266_s1 = inlined_call_operand.vmem [shape: f32[128,32], index: 1, kind: input, shape index: {}]   ;;  %s267_s2 = inlined_call_operand.vmem [shape: f32[1,32], index: 2, kind: input, shape index: {}]   ;;  %s268_s0 = inlined_call_operand.vmem [shape: f32[32,128], index: 0, kind: input, shape index: {}]   ;;  %s269_s3 = inlined_call_operand.vmem [shape: f32[32,32], index: 3, kind: output, shape index: {}]  }
   0x1   :  { %v46_v0 = vld [vmem:[%s266_s1 + $0x78] sm:$0xff]  ;;  %v45_v1 = vld [vmem:[%s266_s1 + $0x70] sm:$0xff]  ;;  %v44_v2 = vld [vmem:[%s266_s1 + $0x68] sm:$0xff]  ;;  %19 = vst.msk [vmem:[#allocation2] sm:$0xff] %vm18_vm0, %v158_v3 }
   0x2   :  { %109 = vmatpush.msra.mxu2 %v46_v0  ;;  %110 = vmatpush.msra.mxu3 %v46_v0  ;;  %v43_v4 = vld [vmem:[%s266_s1 + $0x60] sm:$0xff]  ;;  %20 = vst.msk [vmem:[#allocation2 + $0x8] sm:$0xff] %vm18_vm0, %v158_v3  ;;  %v42_v5 = vld [vmem:[%s266_s1 + $0x58] sm:$0xff]  ;;  %v41_v6 = vld [vmem:[%s266_s1 + $0x50] sm:$0xff] }
   0x3   :  { %47 = vmatpush.msra.mxu0 %v46_v0  ;;  %108 = vmatpush.msra.mxu1 %v46_v0  ;;  %21 = vst.msk [vmem:[#allocation2 + $0x10] sm:$0xff] %vm18_vm0, %v158_v3  ;;  %v40_v7 = vld [vmem:[%s266_s1 + $0x48] sm:$0xff]  ;;  %v39_v8 = vld [vmem:[%s266_s1 + $0x40] sm:$0xff]  ;;  %v38_v9 = vld [vmem:[%s266_s1 + $0x38] sm:$0xff] }
   0x4   :  { %112 = vmatpush.msra.mxu2 %v45_v1  ;;  %113 = vmatpush.msra.mxu3 %v45_v1  ;;  %22 = vst.msk [vmem:[#allocation2 + $0x18] sm:$0xff] %vm18_vm0, %v158_v3  ;;  %v37_v10 = vld [vmem:[%s266_s1 + $0x30] sm:$0xff]  ;;  %v36_v11 = vld [vmem:[%s266_s1 + $0x28] sm:$0xff]  ;;  %v35_v12 = vld [vmem:[%s266_s1 + $0x20] sm:$0xff] }
   0x5   :  { %48 = vmatpush.msra.mxu0 %v45_v1  ;;  %111 = vmatpush.msra.mxu1 %v45_v1  ;;  %v34_v13 = vld [vmem:[%s266_s1 + $0x18] sm:$0xff]  ;;  %v33_v14 = vld [vmem:[%s266_s1 + $0x10] sm:$0xff]  ;;  %v32_v15 = vld [vmem:[%s266_s1 + $0x8] sm:$0xff] }
   0x6   :  { %115 = vmatpush.msra.mxu2 %v44_v2  ;;  %116 = vmatpush.msra.mxu3 %v44_v2  ;;  %v31_v16 = vld [vmem:[%s266_s1] sm:$0xff]  ;;  %v29_v17 = vld [vmem:[%s268_s0 + $0x10] sm:$0xff]  ;;  %v30_v18 = vld [vmem:[%s268_s0 + $0x18] sm:$0xff] }
   0x7   :  { %49 = vmatpush.msra.mxu0 %v44_v2  ;;  %114 = vmatpush.msra.mxu1 %v44_v2  ;;  %v27_v19 = vld [vmem:[%s268_s0] sm:$0xff]  ;;  %v28_v20 = vld [vmem:[%s268_s0 + $0x8] sm:$0xff] }
   0x8   :  { %118 = vmatpush.msra.mxu2 %v43_v4  ;;  %119 = vmatpush.msra.mxu3 %v43_v4  ;;  %v23_v21 = vld [vmem:[#allocation2] sm:$0xff] }
   0x9   :  { %50 = vmatpush.msra.mxu0 %v43_v4  ;;  %117 = vmatpush.msra.mxu1 %v43_v4  ;;  %v24_v22 = vld [vmem:[#allocation2 + $0x8] sm:$0xff]  ;;  %v157_v33 = vld [vmem:[%s267_s2] ss:$0 sm:$0xff] }
   0xa   :  { %121 = vmatpush.msra.mxu2 %v42_v5  ;;  %122 = vmatpush.msra.mxu3 %v42_v5  ;;  %v25_v27 = vld [vmem:[#allocation2 + $0x10] sm:$0xff] }
   0xb   :  { %51 = vmatpush.msra.mxu0 %v42_v5  ;;  %120 = vmatpush.msra.mxu1 %v42_v5  ;;  %v26_v28 = vld [vmem:[#allocation2 + $0x18] sm:$0xff] }
   0xc   :  { %124 = vmatpush.msra.mxu2 %v41_v6  ;;  %125 = vmatpush.msra.mxu3 %v41_v6 }
   0xd   :  { %52 = vmatpush.msra.mxu0 %v41_v6  ;;  %123 = vmatpush.msra.mxu1 %v41_v6 }
   0xe   :  { %127 = vmatpush.msra.mxu2 %v40_v7  ;;  %128 = vmatpush.msra.mxu3 %v40_v7 }
   0xf   :  { %53 = vmatpush.msra.mxu0 %v40_v7  ;;  %126 = vmatpush.msra.mxu1 %v40_v7 }
  0x10   :  { %130 = vmatpush.msra.mxu2 %v39_v8  ;;  %131 = vmatpush.msra.mxu3 %v39_v8 }
  0x11   :  { %54 = vmatpush.msra.mxu0 %v39_v8  ;;  %129 = vmatpush.msra.mxu1 %v39_v8 }
  0x12   :  { %133 = vmatpush.msra.mxu2 %v38_v9  ;;  %134 = vmatpush.msra.mxu3 %v38_v9 }
  0x13   :  { %55 = vmatpush.msra.mxu0 %v38_v9  ;;  %132 = vmatpush.msra.mxu1 %v38_v9 }
  0x14   :  { %136 = vmatpush.msra.mxu2 %v37_v10  ;;  %137 = vmatpush.msra.mxu3 %v37_v10 }
  0x15   :  { %56 = vmatpush.msra.mxu0 %v37_v10  ;;  %135 = vmatpush.msra.mxu1 %v37_v10 }
  0x16   :  { %139 = vmatpush.msra.mxu2 %v36_v11  ;;  %140 = vmatpush.msra.mxu3 %v36_v11 }
  0x17   :  { %57 = vmatpush.msra.mxu0 %v36_v11  ;;  %138 = vmatpush.msra.mxu1 %v36_v11 }
  0x18   :  { %142 = vmatpush.msra.mxu2 %v35_v12  ;;  %143 = vmatpush.msra.mxu3 %v35_v12 }
  0x19   :  { %58 = vmatpush.msra.mxu0 %v35_v12  ;;  %141 = vmatpush.msra.mxu1 %v35_v12 }
  0x1a   :  { %145 = vmatpush.msra.mxu2 %v34_v13  ;;  %146 = vmatpush.msra.mxu3 %v34_v13 }
  0x1b   :  { %59 = vmatpush.msra.mxu0 %v34_v13  ;;  %144 = vmatpush.msra.mxu1 %v34_v13 }
  0x1c   :  { %148 = vmatpush.msra.mxu2 %v33_v14  ;;  %149 = vmatpush.msra.mxu3 %v33_v14 }
  0x1d   :  { %60 = vmatpush.msra.mxu0 %v33_v14  ;;  %147 = vmatpush.msra.mxu1 %v33_v14 }
  0x1e   :  { %151 = vmatpush.msra.mxu2 %v32_v15  ;;  %152 = vmatpush.msra.mxu3 %v32_v15 }
  0x1f   :  { %61 = vmatpush.msra.mxu0 %v32_v15  ;;  %150 = vmatpush.msra.mxu1 %v32_v15 }
  0x20   :  { %154 = vmatpush.msra.mxu2 %v31_v16  ;;  %155 = vmatpush.msra.mxu3 %v31_v16 }
  0x21   :  { %69 = vmatmul.f32.vlgmr.msra.gmra.mxu2 %v29_v17  ;;  %72 = vmatmul.f32.vlgmr.msra.gmra.mxu3 %v30_v18 }
  0x22   :  { %62 = vmatpush.msra.mxu0 %v31_v16  ;;  %153 = vmatpush.msra.mxu1 %v31_v16 }
  0x23   :  { %63 = vmatmul.f32.vlgmr.msra.gmra.mxu0 %v27_v19  ;;  %66 = vmatmul.f32.vlgmr.msra.gmra.mxu1 %v28_v20 }
  0xa0   :  { %v64_v23 = vpop.f32.mrf.mxu0  ;;  %v67_v24 = vpop.f32.mrf.mxu1 }
  0xa1   :  { %v76_v25 = vadd.f32 %v64_v23, %v23_v21  ;;  %v77_v26 = vadd.f32 %v67_v24, %v24_v22 }
  0xa3   :  { %81 = vst.msk [vmem:[#allocation2] sm:$0xff] %vm18_vm0, %v76_v25 }
  0xa4   :  { %82 = vst.msk [vmem:[#allocation2 + $0x8] sm:$0xff] %vm18_vm0, %v77_v26  ;;  %v70_v29 = vpop.f32.mrf.mxu2  ;;  %v73_v30 = vpop.f32.mrf.mxu3 }
  0xa5   :  { %v78_v31 = vadd.f32 %v70_v29, %v25_v27  ;;  %v79_v32 = vadd.f32 %v73_v30, %v26_v28 }
  0xa7   :  { %83 = vst.msk [vmem:[#allocation2 + $0x10] sm:$0xff] %vm18_vm0, %v78_v31 }
  0xa8   :  { %84 = vst.msk [vmem:[#allocation2 + $0x18] sm:$0xff] %vm18_vm0, %v79_v32 }
  0xaa   :  { %v88_v34 = vld [vmem:[#allocation2] sm:$0xff] }
  0xab   :  { %v96_v35 = vadd.f32 %v157_v33, %v88_v34  ;;  %v89_v36 = vld [vmem:[#allocation2 + $0x8] sm:$0xff] }
  0xac   :  { %v97_v37 = vadd.f32 %v157_v33, %v89_v36 }
  0xad   :  { %100 = vst.msk [vmem:[%s269_s3] sm:$0xff] %vm18_vm0, %v96_v35 }
  0xae   :  { %101 = vst.msk [vmem:[%s269_s3 + $0x8] sm:$0xff] %vm18_vm0, %v97_v37  ;;  %v90_v38 = vld [vmem:[#allocation2 + $0x10] sm:$0xff] }
  0xaf   :  { %v98_v39 = vadd.f32 %v157_v33, %v90_v38  ;;  %v91_v40 = vld [vmem:[#allocation2 + $0x18] sm:$0xff] }
  0xb0   :  { %v99_v41 = vadd.f32 %v157_v33, %v91_v40 }
  0xb1   :  { %102 = vst.msk [vmem:[%s269_s3 + $0x10] sm:$0xff] %vm18_vm0, %v98_v39 }
  0xb2   :  { %103 = vst.msk [vmem:[%s269_s3 + $0x18] sm:$0xff] %vm18_vm0, %v99_v41 }

// kernel: efficient_self_attention_forward.7
= control target key start
LH: loop header
LB: loop body
LE: loop exit
PB: predicated region body
PF: predicated region fallthrough
CT: control target
= control target key end

     0   :  { %vm18_vm0 = vcmask 261120   ;;  %v151_v8 = vmov 32.0   ;;  %s229_s0 = inlined_call_operand.vmem [shape: f32[32,32], index: 0, kind: input, shape index: {}]   ;;  %s230_s1 = inlined_call_operand.vmem [shape: f32[1,32], index: 1, kind: input, shape index: {}]   ;;  %s231_s2 = inlined_call_operand.vmem [shape: f32[1,32], index: 2, kind: input, shape index: {}]   ;;  %s232_s3 = inlined_call_operand.vmem [shape: f32[32,32], index: 3, kind: output, shape index: {}]  }
   0x1   :  { %v16_v0 = vld [vmem:[%s229_s0 + $0x10] sm:$0xff]  ;;  %v14_v1 = vld [vmem:[%s229_s0] sm:$0xff]  ;;  %v17_v4 = vld [vmem:[%s229_s0 + $0x18] sm:$0xff]  ;;  %141 = vrcp.f32 %v151_v8 }
   0x2   :  { %v25_v2 = vsel %vm18_vm0, %v16_v0, 0.0  ;;  %v19_v3 = vsel %vm18_vm0, %v14_v1, 0.0  ;;  %v15_v5 = vld [vmem:[%s229_s0 + $0x8] sm:$0xff]  ;;  %v28_v6 = vsel %vm18_vm0, %v17_v4, 0.0  ;;  %v139_v61 = vld [vmem:[%s230_s1] ss:$0 sm:$0xff] }
   0x3   :  { %26 = vadd.xlane.f32.xlu1 %v25_v2  ;;  %20 = vadd.xlane.f32.xlu0 %v19_v3  ;;  %v22_v7 = vsel %vm18_vm0, %v15_v5, 0.0  ;;  %v140_v2 = vld [vmem:[%s231_s2] ss:$0 sm:$0xff] }
   0x7   :  { %v142_v9 = vpop.eup %141 }
   0x8   :  { %v32_v10 = vmul.f32 32.0, %v142_v9  ;;  %vm36_vm1 = vweird.f32 %v142_v9 }
   0xa   :  { %v33_v11 = vsub.f32 1.0, %v32_v10 }
   0xb   :  { %29 = vadd.xlane.f32.xlu1 %v28_v6  ;;  %23 = vadd.xlane.f32.xlu0 %v22_v7 }
   0xc   :  { %v34_v12 = vmul.f32 %v142_v9, %v33_v11 }
   0xe   :  { %v35_v13 = vadd.f32 %v142_v9, %v34_v12 }
  0x10   :  { %v37_v14 = vsel %vm36_vm1, %v142_v9, %v35_v13 }
  0x76   :  { %v27_v15 = vpop.xlane.xlu1 %26  ;;  %v21_v16 = vpop.xlane.xlu0 %20 }
  0x77   :  { %v40_v17 = vmul.f32 %v37_v14, %v27_v15  ;;  %v38_v18 = vmul.f32 %v37_v14, %v21_v16 }
  0x79   :  { %v188_v19 = vsub.f32 %v16_v0, %v40_v17  ;;  %v42_v20 = vsub.f32 %v14_v1, %v38_v18 }
  0x7b   :  { %v48_v21 = vmul.f32 %v188_v19, %v188_v19  ;;  %v46_v22 = vmul.f32 %v42_v20, %v42_v20 }
  0x7d   :  { %v56_v23 = vsel %vm18_vm0, %v48_v21, 0.0  ;;  %v50_v24 = vsel %vm18_vm0, %v46_v22, 0.0 }
  0x7e   :  { %v30_v25 = vpop.xlane.xlu1 %29  ;;  %57 = vadd.xlane.f32.xlu0 %v56_v23  ;;  %51 = vadd.xlane.f32.xlu2 %v50_v24  ;;  %v24_v26 = vpop.xlane.xlu0 %23 }
  0x7f   :  { %v41_v27 = vmul.f32 %v37_v14, %v30_v25  ;;  %v39_v28 = vmul.f32 %v37_v14, %v24_v26 }
  0x81   :  { %v194_v29 = vsub.f32 %v17_v4, %v41_v27  ;;  %v196_v30 = vsub.f32 %v15_v5, %v39_v28 }
  0x83   :  { %v49_v31 = vmul.f32 %v194_v29, %v194_v29  ;;  %v47_v32 = vmul.f32 %v196_v30, %v196_v30 }
  0x85   :  { %v59_v33 = vsel %vm18_vm0, %v49_v31, 0.0  ;;  %v53_v34 = vsel %vm18_vm0, %v47_v32, 0.0 }
  0x86   :  { %60 = vadd.xlane.f32.xlu1 %v59_v33  ;;  %54 = vadd.xlane.f32.xlu2 %v53_v34 }
  0xf1   :  { %v52_v35 = vpop.xlane.xlu2 %51  ;;  %v58_v36 = vpop.xlane.xlu0 %57 }
  0xf2   :  { %v62_v37 = vmul.f32 %v52_v35, %v37_v14  ;;  %v64_v38 = vmul.f32 %v58_v36, %v37_v14 }
  0xf4   :  { %v66_v39 = vadd.f32 1e-05, %v62_v37  ;;  %v68_v40 = vadd.f32 1e-05, %v64_v38 }
  0xf6   :  { %143 = vrsqrt.f32 %v66_v39  ;;  %vm76_vm4 = vweird.f32 %v66_v39  ;;  %vm96_vm6 = vweird.f32 %v68_v40 }
  0xf7   :  { %145 = vrsqrt.f32 %v68_v40 }
  0xf9   :  { %v61_v41 = vpop.xlane.xlu1 %60  ;;  %v55_v42 = vpop.xlane.xlu2 %54 }
  0xfa   :  { %v65_v43 = vmul.f32 %v61_v41, %v37_v14  ;;  %v63_v44 = vmul.f32 %v55_v42, %v37_v14 }
  0xfc   :  { %v144_v45 = vpop.eup %143  ;;  %v69_v46 = vadd.f32 1e-05, %v65_v43  ;;  %v67_v47 = vadd.f32 1e-05, %v63_v44 }
  0xfd   :  { %v146_v48 = vpop.eup %145  ;;  %v71_v49 = vmul.f32 %v144_v45, %v66_v39  ;;  %vm77_vm2 = vweird.f32 %v144_v45 }
  0xfe   :  { %v91_v50 = vmul.f32 %v146_v48, %v68_v40  ;;  %147 = vrsqrt.f32 %v69_v46  ;;  %vm97_vm3 = vweird.f32 %v146_v48  ;;  %vm78_vm5 = vmor %vm76_vm4, %vm77_vm2  ;;  %vm106_vm10 = vweird.f32 %v69_v46 }
  0xff   :  { %v72_v51 = vmul.f32 %v144_v45, %v71_v49  ;;  %149 = vrsqrt.f32 %v67_v47  ;;  %vm98_vm7 = vmor %vm96_vm6, %vm97_vm3  ;;  %vm86_vm12 = vweird.f32 %v67_v47 }
 0x100   :  { %v92_v52 = vmul.f32 %v146_v48, %v91_v50 }
 0x101   :  { %v73_v53 = vmul.f32 0.5, %v72_v51 }
 0x102   :  { %v93_v54 = vmul.f32 0.5, %v92_v52 }
 0x103   :  { %v74_v55 = vsub.f32 1.5, %v73_v53 }
 0x104   :  { %v148_v56 = vpop.eup %147  ;;  %v94_v57 = vsub.f32 1.5, %v93_v54 }
 0x105   :  { %v150_v58 = vpop.eup %149  ;;  %v75_v59 = vmul.f32 %v144_v45, %v74_v55  ;;  %v101_v60 = vmul.f32 %v148_v56, %v69_v46  ;;  %vm107_vm8 = vweird.f32 %v148_v56 }
 0x106   :  { %v95_v62 = vmul.f32 %v146_v48, %v94_v57  ;;  %v81_v63 = vmul.f32 %v150_v58, %v67_v47  ;;  %vm87_vm9 = vweird.f32 %v150_v58  ;;  %vm108_vm11 = vmor %vm106_vm10, %vm107_vm8 }
 0x107   :  { %v79_v0 = vsel %vm78_vm5, %v144_v45, %v75_v59  ;;  %v102_v1 = vmul.f32 %v148_v56, %v101_v60  ;;  %vm88_vm13 = vmor %vm86_vm12, %vm87_vm9 }
 0x108   :  { %v110_v3 = vmul.f32 %v79_v0, %v42_v20  ;;  %v99_v4 = vsel %vm98_vm7, %v146_v48, %v95_v62  ;;  %v82_v5 = vmul.f32 %v150_v58, %v81_v63 }
 0x109   :  { %v112_v6 = vmul.f32 %v99_v4, %v188_v19  ;;  %v103_v7 = vmul.f32 0.5, %v102_v1 }
 0x10a   :  { %v118_v8 = vmul.f32 %v139_v61, %v110_v3  ;;  %v83_v9 = vmul.f32 0.5, %v82_v5 }
 0x10b   :  { %v120_v10 = vmul.f32 %v139_v61, %v112_v6  ;;  %v104_v11 = vsub.f32 1.5, %v103_v7 }
 0x10c   :  { %v126_v12 = vadd.f32 %v140_v2, %v118_v8  ;;  %v84_v13 = vsub.f32 1.5, %v83_v9 }
 0x10d   :  { %v128_v14 = vadd.f32 %v140_v2, %v120_v10  ;;  %v105_v15 = vmul.f32 %v148_v56, %v104_v11 }
 0x10e   :  { %130 = vst.msk [vmem:[%s232_s3] sm:$0xff] %vm18_vm0, %v126_v12  ;;  %v85_v16 = vmul.f32 %v150_v58, %v84_v13 }
 0x10f   :  { %132 = vst.msk [vmem:[%s232_s3 + $0x10] sm:$0xff] %vm18_vm0, %v128_v14  ;;  %v109_v17 = vsel %vm108_vm11, %v148_v56, %v105_v15 }
 0x110   :  { %v113_v18 = vmul.f32 %v109_v17, %v194_v29  ;;  %v89_v19 = vsel %vm88_vm13, %v150_v58, %v85_v16 }
 0x111   :  { %v111_v20 = vmul.f32 %v89_v19, %v196_v30 }
 0x112   :  { %v121_v21 = vmul.f32 %v139_v61, %v113_v18 }
 0x113   :  { %v119_v22 = vmul.f32 %v139_v61, %v111_v20 }
 0x114   :  { %v129_v23 = vadd.f32 %v140_v2, %v121_v21 }
 0x115   :  { %v127_v24 = vadd.f32 %v140_v2, %v119_v22 }
 0x116   :  { %133 = vst.msk [vmem:[%s232_s3 + $0x18] sm:$0xff] %vm18_vm0, %v129_v23 }
 0x117   :  { %131 = vst.msk [vmem:[%s232_s3 + $0x8] sm:$0xff] %vm18_vm0, %v127_v24 }

// kernel: efficient_self_attention_forward.8
= control target key start
LH: loop header
LB: loop body
LE: loop exit
PB: predicated region body
PF: predicated region fallthrough
CT: control target
= control target key end

     0   :  { %vm26_vm0 = vcmask 261120   ;;  %v204_v3 = vmov 0.0   ;;  %s338_s1 = inlined_call_operand.vmem [shape: f32[32,32], index: 1, kind: input, shape index: {}]   ;;  %s339_s2 = inlined_call_operand.vmem [shape: f32[32,32], index: 2, kind: input, shape index: {}]   ;;  %s340_s0 = inlined_call_operand.vmem [shape: f32[32,32], index: 0, kind: input, shape index: {}]   ;;  %s341_s3 = inlined_call_operand.vmem [shape: f32[1,32], index: 3, kind: input, shape index: {}]   ;;  %s342_s4 = inlined_call_operand.vmem [shape: f32[1,32], index: 4, kind: input, shape index: {}]   ;;  %s343_s5 = inlined_call_operand.vmem [shape: f32[32,32], index: 5, kind: output, shape index: {0}]   ;;  %s344_s6 = inlined_call_operand.vmem [shape: f32[32,32], index: 6, kind: output, shape index: {1}]  }
   0x1   :  { %v46_v0 = vld [vmem:[%s338_s1 + $0x18] sm:$0xff]  ;;  %v45_v2 = vld [vmem:[%s338_s1 + $0x10] sm:$0xff]  ;;  %27 = vst.msk [vmem:[#allocation2] sm:$0xff] %vm26_vm0, %v204_v3  ;;  %v44_v5 = vld [vmem:[%s338_s1 + $0x8] sm:$0xff] }
   0x2   :  { %v104_v1 = vld [vmem:[%s339_s2 + $0x18] sm:$0xff]  ;;  %193 = vmatpush.msra.mxu2 %v46_v0  ;;  %v103_v4 = vld [vmem:[%s339_s2 + $0x10] sm:$0xff]  ;;  %28 = vst.msk [vmem:[#allocation2 + $0x8] sm:$0xff] %vm26_vm0, %v204_v3  ;;  %v102_v6 = vld [vmem:[%s339_s2 + $0x8] sm:$0xff]  ;;  %72 = vmatpush.msra.mxu0 %v46_v0 }
   0x3   :  { %197 = vmatpush.msra.mxu3 %v104_v1  ;;  %117 = vmatpush.msra.mxu1 %v104_v1  ;;  %29 = vst.msk [vmem:[#allocation2 + $0x10] sm:$0xff] %vm26_vm0, %v204_v3  ;;  %v43_v7 = vld [vmem:[%s338_s1] sm:$0xff]  ;;  %v37_v9 = vld [vmem:[%s340_s0 + $0x10] sm:$0xff]  ;;  %v38_v11 = vld [vmem:[%s340_s0 + $0x18] sm:$0xff] }
   0x4   :  { %194 = vmatpush.msra.mxu2 %v45_v2  ;;  %30 = vst.msk [vmem:[#allocation2 + $0x18] sm:$0xff] %vm26_vm0, %v204_v3  ;;  %v101_v8 = vld [vmem:[%s339_s2] sm:$0xff]  ;;  %73 = vmatpush.msra.mxu0 %v45_v2  ;;  %v36_v12 = vld [vmem:[%s340_s0 + $0x8] sm:$0xff] }
   0x5   :  { %198 = vmatpush.msra.mxu3 %v103_v4  ;;  %118 = vmatpush.msra.mxu1 %v103_v4  ;;  %31 = vst.msk [vmem:[#allocation3] sm:$0xff] %vm26_vm0, %v204_v3  ;;  %v35_v10 = vld [vmem:[%s340_s0] sm:$0xff] }
   0x6   :  { %195 = vmatpush.msra.mxu2 %v44_v5  ;;  %32 = vst.msk [vmem:[#allocation3 + $0x8] sm:$0xff] %vm26_vm0, %v204_v3  ;;  %74 = vmatpush.msra.mxu0 %v44_v5  ;;  %v202_v27 = vld [vmem:[%s341_s3] ss:$0 sm:$0xff] }
   0x7   :  { %199 = vmatpush.msra.mxu3 %v102_v6  ;;  %119 = vmatpush.msra.mxu1 %v102_v6  ;;  %33 = vst.msk [vmem:[#allocation3 + $0x10] sm:$0xff] %vm26_vm0, %v204_v3  ;;  %v203_v28 = vld [vmem:[%s342_s4] ss:$0 sm:$0xff] }
   0x8   :  { %196 = vmatpush.msra.mxu2 %v43_v7  ;;  %34 = vst.msk [vmem:[#allocation3 + $0x18] sm:$0xff] %vm26_vm0, %v204_v3  ;;  %75 = vmatpush.msra.mxu0 %v43_v7  ;;  %v39_v13 = vld [vmem:[#allocation2] sm:$0xff] }
   0x9   :  { %200 = vmatpush.msra.mxu3 %v101_v8  ;;  %187 = vmatmul.msk.f32.vlgmr.msra.gmra.mxu2 %vm26_vm0, %v37_v9  ;;  %v40_v25 = vld [vmem:[#allocation2 + $0x8] sm:$0xff] }
   0xa   :  { %191 = vmatmul.msk.f32.vlgmr.msra.gmra.mxu3 %vm26_vm0, %v37_v9  ;;  %120 = vmatpush.msra.mxu1 %v101_v8  ;;  %v41_v19 = vld [vmem:[#allocation2 + $0x10] sm:$0xff] }
   0xb   :  { %185 = vmatmul.msk.f32.vlgmr.msra.gmra.mxu0 %vm26_vm0, %v35_v10  ;;  %189 = vmatmul.msk.f32.vlgmr.msra.gmra.mxu1 %vm26_vm0, %v35_v10  ;;  %v42_v34 = vld [vmem:[#allocation2 + $0x18] sm:$0xff] }
   0xc   :  { %v97_v14 = vld [vmem:[#allocation3] sm:$0xff] }
   0xd   :  { %v98_v26 = vld [vmem:[#allocation3 + $0x8] sm:$0xff] }
   0xe   :  { %v99_v20 = vld [vmem:[#allocation3 + $0x10] sm:$0xff] }
   0xf   :  { %v100_v35 = vld [vmem:[#allocation3 + $0x18] sm:$0xff] }
  0x11   :  { %188 = vmatmul.msk.f32.gmra.mxu2 %vm26_vm0, %v38_v11 }
  0x12   :  { %192 = vmatmul.msk.f32.gmra.mxu3 %vm26_vm0, %v38_v11 }
  0x13   :  { %186 = vmatmul.msk.f32.gmra.mxu0 %vm26_vm0, %v36_v12  ;;  %190 = vmatmul.msk.f32.gmra.mxu1 %vm26_vm0, %v36_v12 }
  0x88   :  { %v77_v15 = vpop.f32.mrf.mxu0  ;;  %v122_v16 = vpop.f32.mrf.mxu1 }
  0x89   :  { %v89_v17 = vadd.f32 %v77_v15, %v39_v13  ;;  %v134_v18 = vadd.f32 %v122_v16, %v97_v14 }
  0x8b   :  { %93 = vst.msk [vmem:[#allocation2] sm:$0xff] %vm26_vm0, %v89_v17 }
  0x8c   :  { %v83_v21 = vpop.f32.mrf.mxu2  ;;  %138 = vst.msk [vmem:[#allocation3] sm:$0xff] %vm26_vm0, %v134_v18 }
  0x8d   :  { %v128_v22 = vpop.f32.mrf.mxu3  ;;  %v91_v23 = vadd.f32 %v83_v21, %v41_v19 }
  0x8e   :  { %v136_v24 = vadd.f32 %v128_v22, %v99_v20 }
  0x8f   :  { %95 = vst.msk [vmem:[#allocation2 + $0x10] sm:$0xff] %vm26_vm0, %v91_v23 }
  0x90   :  { %140 = vst.msk [vmem:[#allocation3 + $0x10] sm:$0xff] %vm26_vm0, %v136_v24  ;;  %v80_v29 = vpop.f32.mrf.mxu0  ;;  %v125_v30 = vpop.f32.mrf.mxu1 }
  0x91   :  { %v90_v31 = vadd.f32 %v80_v29, %v40_v25  ;;  %v135_v32 = vadd.f32 %v125_v30, %v98_v26 }
  0x92   :  { %v145_v33 = vld [vmem:[#allocation2] sm:$0xff] }
  0x93   :  { %v153_v36 = vadd.f32 %v202_v27, %v145_v33  ;;  %v161_v37 = vld [vmem:[#allocation3] sm:$0xff]  ;;  %94 = vst.msk [vmem:[#allocation2 + $0x8] sm:$0xff] %vm26_vm0, %v90_v31 }
  0x94   :  { %v169_v38 = vadd.f32 %v203_v28, %v161_v37  ;;  %v86_v39 = vpop.f32.mrf.mxu2  ;;  %139 = vst.msk [vmem:[#allocation3 + $0x8] sm:$0xff] %vm26_vm0, %v135_v32 }
  0x95   :  { %v131_v40 = vpop.f32.mrf.mxu3  ;;  %157 = vst.msk [vmem:[%s343_s5] sm:$0xff] %vm26_vm0, %v153_v36  ;;  %v92_v41 = vadd.f32 %v86_v39, %v42_v34 }
  0x96   :  { %v137_v42 = vadd.f32 %v131_v40, %v100_v35  ;;  %v147_v43 = vld [vmem:[#allocation2 + $0x10] sm:$0xff]  ;;  %173 = vst.msk [vmem:[%s344_s6] sm:$0xff] %vm26_vm0, %v169_v38 }
  0x97   :  { %v155_v44 = vadd.f32 %v202_v27, %v147_v43  ;;  %v163_v45 = vld [vmem:[#allocation3 + $0x10] sm:$0xff]  ;;  %96 = vst.msk [vmem:[#allocation2 + $0x18] sm:$0xff] %vm26_vm0, %v92_v41 }
  0x98   :  { %v171_v46 = vadd.f32 %v203_v28, %v163_v45  ;;  %141 = vst.msk [vmem:[#allocation3 + $0x18] sm:$0xff] %vm26_vm0, %v137_v42 }
  0x99   :  { %159 = vst.msk [vmem:[%s343_s5 + $0x10] sm:$0xff] %vm26_vm0, %v155_v44 }
  0x9a   :  { %175 = vst.msk [vmem:[%s344_s6 + $0x10] sm:$0xff] %vm26_vm0, %v171_v46  ;;  %v146_v47 = vld [vmem:[#allocation2 + $0x8] sm:$0xff] }
  0x9b   :  { %v154_v48 = vadd.f32 %v202_v27, %v146_v47  ;;  %v162_v49 = vld [vmem:[#allocation3 + $0x8] sm:$0xff] }
  0x9c   :  { %v170_v50 = vadd.f32 %v203_v28, %v162_v49 }
  0x9d   :  { %158 = vst.msk [vmem:[%s343_s5 + $0x8] sm:$0xff] %vm26_vm0, %v154_v48 }
  0x9e   :  { %v148_v51 = vld [vmem:[#allocation2 + $0x18] sm:$0xff]  ;;  %174 = vst.msk [vmem:[%s344_s6 + $0x8] sm:$0xff] %vm26_vm0, %v170_v50 }
  0x9f   :  { %v156_v52 = vadd.f32 %v202_v27, %v148_v51  ;;  %v164_v53 = vld [vmem:[#allocation3 + $0x18] sm:$0xff] }
  0xa0   :  { %v172_v54 = vadd.f32 %v203_v28, %v164_v53 }
  0xa1   :  { %160 = vst.msk [vmem:[%s343_s5 + $0x18] sm:$0xff] %vm26_vm0, %v156_v52 }
  0xa2   :  { %176 = vst.msk [vmem:[%s344_s6 + $0x18] sm:$0xff] %vm26_vm0, %v172_v54 }

// kernel: efficient_self_attention_forward.9
= control target key start
LH: loop header
LB: loop body
LE: loop exit
PB: predicated region body
PF: predicated region fallthrough
CT: control target
= control target key end

     0   :  { %s1590_s21 = smov 0   ;;  %s1592_s22 = smov 0   ;;  %s1993_s0 = inlined_call_operand.vmem [shape: f32[2,2,64,16], index: 0, kind: input, shape index: {}]   ;;  %s1994_s1 = inlined_call_operand.vmem [shape: f32[2,2,16,16], index: 1, kind: input, shape index: {}]   ;;  %s1995_s2 = inlined_call_operand.vmem [shape: f32[2,2,16,16], index: 2, kind: input, shape index: {}]   ;;  %s1996_s3 = inlined_call_operand.vmem [shape: f32[32,32], index: 3, kind: input, shape index: {}]   ;;  %s1997_s4 = inlined_call_operand.vmem [shape: f32[1,32], index: 4, kind: input, shape index: {}]   ;;  %s1998_s5 = inlined_call_operand.vmem [shape: f32[2,64,32], index: 5, kind: output, shape index: {0}]   ;;  %s1999_s6 = inlined_call_operand.vmem [shape: f32[2,2,64,16], index: 6, kind: output, shape index: {1}]  }
   0x1   :  { %s1594_s23 = smov 0  }
   0x2 LB: > { %s29_s24 = sadd.s32 1, %s1548_s22  ;;  %p1372_p0 = scmp.ge.s32.totalorder %s1552_s23, 1  ;;  %s1552_s23 = sphi %s1594_s23, %s17_s23   ;;  %s1548_s22 = sphi %s1592_s22, %s2005_s22   ;;  %s1544_s21 = sphi %s1590_s21, %s2004_s21  }
   0x3   : > { %p31_p1 = scmp.ge.s32.totalorder %s29_s24, 2  ;;  %p258_p2 = scmp.lt.s32.totalorder %s1552_s23, 3 }
   0x5   : > { %s2007_s24 = smov (%p31_p1, %s29_s24), 0  ;;  %p259_p3 = pnand %p1372_p0, %p258_p2 }
   0x6   : > { %p316_p4 = scmp.lt.s32.totalorder (!%p259_p3), %s1544_s21, 1  ;;  %s1554_s15 = smov (!%p259_p3), 16  }
   0x7   : > { %262 = sbr.rel (%p259_p3) target bundleno = 996 (0x3e4), region = 40 }
   0xc   : > { %s2009_s21 = smov (!%p316_p4, %s1544_s21), 1  ;;  %vm395_vm0 = vcmask 130048  }
   0xd   : > { %s1429_s25 = sshll.u32 %s2009_s21, 7  ;;  %s1430_s26 = sshll.u32 %s2009_s21, 5 }
   0xe   : > { %s1617_s29 = scalar_lea.vmem %s1993_s0, %s1429_s25  ;;  %s329_s8 = scalar_lea.vmem %s1994_s1, %s1430_s26 }
   0xf   : > { %v388_v0 = vld [vmem:[%s329_s8 + $0x8] sm:$0xff]  ;;  %v390_v1 = vld [vmem:[%s329_s8 + $0x18] sm:$0xff]  ;;  %v355_v2 = vld [vmem:[%s1617_s29] sm:$0xff]  ;;  %s1758_s11 = scalar_lea.vmem %s1995_s2, %s1430_s26  ;;  %s1767_s14 = scalar_lea.vmem %s1999_s6, %s1429_s25 }
  0x10   : > { %1383 = vmatpush.xpose.msk.msra.mxu0 %vm395_vm0, %v388_v0  ;;  %1393 = vmatpush.xpose.msk.msra.mxu1 %vm395_vm0, %v390_v1  ;;  %v363_v3 = vld [vmem:[%s1617_s29 + $0x40] sm:$0xff]  ;;  %v389_v5 = vld [vmem:[%s329_s8 + $0x10] sm:$0xff]  ;;  %v371_v6 = vmul.f32 0.25, %v355_v2  ;;  %v356_v8 = vld [vmem:[%s1617_s29 + $0x8] sm:$0xff]  ;;  %s1432_s28 = sshll.u32 %s2009_s21, 6 }
  0x11   : > { %v387_v4 = vld [vmem:[%s329_s8] sm:$0xff]  ;;  %v379_v7 = vmul.f32 0.25, %v363_v3  ;;  %v364_v9 = vld [vmem:[%s1617_s29 + $0x48] sm:$0xff]  ;;  %v372_v10 = vmul.f32 0.25, %v356_v8  ;;  %v357_v12 = vld [vmem:[%s1617_s29 + $0x10] sm:$0xff]  ;;  %s1962_s9 = scalar_lea.vmem %s1998_s5, %s1432_s28 }
  0x12   : > { %v380_v11 = vmul.f32 0.25, %v364_v9  ;;  %v365_v13 = vld [vmem:[%s1617_s29 + $0x50] sm:$0xff]  ;;  %v373_v14 = vmul.f32 0.25, %v357_v12  ;;  %v358_v16 = vld [vmem:[%s1617_s29 + $0x18] sm:$0xff]  ;;  %v359_v20 = vld [vmem:[%s1617_s29 + $0x20] sm:$0xff] }
  0x13   : > { %v381_v15 = vmul.f32 0.25, %v365_v13  ;;  %v366_v17 = vld [vmem:[%s1617_s29 + $0x58] sm:$0xff]  ;;  %v374_v18 = vmul.f32 0.25, %v358_v16  ;;  %v367_v21 = vld [vmem:[%s1617_s29 + $0x60] sm:$0xff]  ;;  %v375_v22 = vmul.f32 0.25, %v359_v20  ;;  %v360_v24 = vld [vmem:[%s1617_s29 + $0x28] sm:$0xff] }
  0x14   : > { %1384 = vmatpush.xpose.msk.msra.mxu0 %vm395_vm0, %v387_v4  ;;  %1394 = vmatpush.xpose.msk.msra.mxu1 %vm395_vm0, %v389_v5  ;;  %v382_v19 = vmul.f32 0.25, %v366_v17  ;;  %v383_v23 = vmul.f32 0.25, %v367_v21  ;;  %v376_v25 = vmul.f32 0.25, %v360_v24  ;;  %v361_v26 = vld [vmem:[%s1617_s29 + $0x30] sm:$0xff]  ;;  %v362_v28 = vld [vmem:[%s1617_s29 + $0x38] sm:$0xff]  ;;  %v368_v37 = vld [vmem:[%s1617_s29 + $0x68] sm:$0xff] }
  0x15   : > { %v377_v27 = vmul.f32 0.25, %v361_v26  ;;  %v378_v29 = vmul.f32 0.25, %v362_v28  ;;  %v384_v39 = vmul.f32 0.25, %v368_v37  ;;  %v369_v42 = vld [vmem:[%s1617_s29 + $0x70] sm:$0xff]  ;;  %v370_v47 = vld [vmem:[%s1617_s29 + $0x78] sm:$0xff] }
  0x16   : > { %v385_v43 = vmul.f32 0.25, %v369_v42  ;;  %v386_v48 = vmul.f32 0.25, %v370_v47 }
  0x17   : > { %1385 = vmatmul.msk.f32.vlgmr.msra.gmra.mxu0 %vm395_vm0, %v371_v6  ;;  %1395 = vmatmul.msk.f32.vlgmr.msra.gmra.mxu1 %vm395_vm0, %v379_v7 }
  0x1f   : > { %1386 = vmatmul.msk.f32.gmra.mxu0 %vm395_vm0, %v372_v10  ;;  %1396 = vmatmul.msk.f32.gmra.mxu1 %vm395_vm0, %v380_v11 }
  0x27   : > { %1387 = vmatmul.msk.f32.gmra.mxu0 %vm395_vm0, %v373_v14  ;;  %1397 = vmatmul.msk.f32.gmra.mxu1 %vm395_vm0, %v381_v15 }
  0x2f   : > { %1388 = vmatmul.msk.f32.gmra.mxu0 %vm395_vm0, %v374_v18  ;;  %1398 = vmatmul.msk.f32.gmra.mxu1 %vm395_vm0, %v382_v19 }
  0x37   : > { %1389 = vmatmul.msk.f32.gmra.mxu0 %vm395_vm0, %v375_v22  ;;  %1399 = vmatmul.msk.f32.gmra.mxu1 %vm395_vm0, %v383_v23 }
  0x3f   : > { %1390 = vmatmul.msk.f32.gmra.mxu0 %vm395_vm0, %v376_v25  ;;  %1400 = vmatmul.msk.f32.gmra.mxu1 %vm395_vm0, %v384_v39 }
  0x47   : > { %1391 = vmatmul.msk.f32.gmra.mxu0 %vm395_vm0, %v377_v27  ;;  %1401 = vmatmul.msk.f32.gmra.mxu1 %vm395_vm0, %v385_v43 }
  0x4f   : > { %1392 = vmatmul.msk.f32.gmra.mxu0 %vm395_vm0, %v378_v29  ;;  %1402 = vmatmul.msk.f32.gmra.mxu1 %vm395_vm0, %v386_v48 }
  0x94   : > { %v1654_v30 = vpop.f32.mrf.mxu0  ;;  %v1656_v31 = vpop.f32.mrf.mxu1 }
  0x95   : > { %v538_v50 = vsel %vm395_vm0, %v1654_v30, -inf  ;;  %v562_v59 = vsel %vm395_vm0, %v1656_v31, -inf }
  0x9c   : > { %v1658_v32 = vpop.f32.mrf.mxu0  ;;  %v1660_v33 = vpop.f32.mrf.mxu1 }
  0x9d   : > { %v565_v34 = vsel %vm395_vm0, %v1660_v33, -inf  ;;  %v541_v53 = vsel %vm395_vm0, %v1658_v32, -inf }
  0x9e   : > { %566 = vmax.xlane.f32.xlu2 %v565_v34 }
  0xa4   : > { %v1664_v35 = vpop.f32.mrf.mxu0  ;;  %v520_v36 = vpop.f32.mrf.mxu1 }
  0xa5   : > { %v568_v38 = vsel %vm395_vm0, %v520_v36, -inf  ;;  %v544_v57 = vsel %vm395_vm0, %v1664_v35, -inf }
  0xa6   : > { %569 = vmax.xlane.f32.xlu2 %v568_v38 }
  0xac   : > { %v1669_v40 = vpop.f32.mrf.mxu0  ;;  %v1671_v41 = vpop.f32.mrf.mxu1 }
  0xad   : > { %v571_v55 = vsel %vm395_vm0, %v1671_v41, -inf  ;;  %v547_v47 = vsel %vm395_vm0, %v1669_v40, -inf }
  0xb4   : > { %v1675_v44 = vpop.f32.mrf.mxu0  ;;  %v526_v45 = vpop.f32.mrf.mxu1 }
  0xb5   : > { %v574_v46 = vsel %vm395_vm0, %v526_v45, -inf }
  0xb6   : > { %575 = vmax.xlane.f32.xlu2 %v574_v46 }
  0xbc   : > { %v458_v49 = vpop.f32.mrf.mxu0  ;;  %v1703_v14 = vpop.f32.mrf.mxu1 }
  0xbd   : > { %v553_v51 = vsel %vm395_vm0, %v458_v49, -inf  ;;  %v577_v18 = vsel %vm395_vm0, %v1703_v14, -inf }
  0xbe   : > { %539 = vmax.xlane.f32.xlu2 %v538_v50  ;;  %554 = vmax.xlane.f32.xlu0 %v553_v51 }
  0xc4   : > { %v461_v52 = vpop.f32.mrf.mxu0  ;;  %v1713_v22 = vpop.f32.mrf.mxu1 }
  0xc5   : > { %v556_v54 = vsel %vm395_vm0, %v461_v52, -inf  ;;  %v580_v25 = vsel %vm395_vm0, %v1713_v22, -inf }
  0xc6   : > { %542 = vmax.xlane.f32.xlu2 %v541_v53  ;;  %557 = vmax.xlane.f32.xlu0 %v556_v54 }
  0xcc   : > { %v464_v56 = vpop.f32.mrf.mxu0  ;;  %v1723_v34 = vpop.f32.mrf.mxu1 }
  0xcd   : > { %v559_v58 = vsel %vm395_vm0, %v464_v56, -inf }
  0xce   : > { %545 = vmax.xlane.f32.xlu2 %v544_v57  ;;  %572 = vmax.xlane.f32.xlu0 %v571_v55 }
  0xcf   : > { %560 = vmax.xlane.f32.xlu1 %v559_v58 }
  0xd7   : > { %563 = vmax.xlane.f32.xlu1 %v562_v59 }
 0x111   : > { %v567_v60 = vpop.xlane.xlu2 %566 }
 0x112   : > { %v595_v28 = vsub.f32 %v1660_v33, %v567_v60  ;;  %v392_v60 = vld [vmem:[%s1758_s11 + $0x8] sm:$0xff] }
 0x113   : > { %1436 = vmatpush.msra.mxu3 %v392_v60  ;;  %976 = vmatpush.msrb.mxu0 %v392_v60 }
 0x114   : > { %1434 = vmatpush.msrb.mxu1 %v392_v60  ;;  %1435 = vmatpush.msra.mxu2 %v392_v60 }
 0x119   : > { %v570_v61 = vpop.xlane.xlu2 %569 }
 0x11a   : > { %v596_v62 = vsub.f32 %v520_v36, %v570_v61  ;;  %v620_v36 = vmul.f32 1.442695, %v595_v28 }
 0x11c   : > { %v622_v63 = vmul.f32 1.442695, %v596_v62 }
 0x11e   : > { %1466 = vpow2.f32 %v622_v63  ;;  %v391_v63 = vld [vmem:[%s1758_s11] sm:$0xff] }
 0x11f   : > { %1439 = vmatpush.msra.mxu3 %v391_v63  ;;  %977 = vmatpush.msrb.mxu0 %v391_v63 }
 0x120   : > { %1437 = vmatpush.msrb.mxu1 %v391_v63  ;;  %1438 = vmatpush.msra.mxu2 %v391_v63 }
 0x124   : > { %v1693_v0 = vpop.eup %1466 }
 0x125   : > { %v664_v1 = vsel %vm395_vm0, %v1693_v0, 0.0 }
 0x126   : > { %665 = vadd.xlane.f32.xlu2 %v664_v1 }
 0x129   : > { %v576_v2 = vpop.xlane.xlu2 %575 }
 0x12a   : > { %v598_v3 = vsub.f32 %v526_v45, %v576_v2 }
 0x12c   : > { %v626_v4 = vmul.f32 1.442695, %v598_v3 }
 0x12e   : > { %1468 = vpow2.f32 %v626_v4 }
 0x131   : > { %v555_v5 = vpop.xlane.xlu0 %554  ;;  %v540_v43 = vpop.xlane.xlu2 %539 }
 0x132   : > { %v591_v6 = vsub.f32 %v458_v49, %v555_v5  ;;  %v586_v46 = vsub.f32 %v1654_v30, %v540_v43  ;;  %v550_v30 = vsel %vm395_vm0, %v1675_v44, -inf  ;;  %v393_v43 = vld [vmem:[%s1758_s11 + $0x10] sm:$0xff] }
 0x134   : > { %v1697_v7 = vpop.eup %1468  ;;  %v612_v8 = vmul.f32 1.442695, %v591_v6  ;;  %v602_v48 = vmul.f32 1.442695, %v586_v46 }
 0x135   : > { %v670_v9 = vsel %vm395_vm0, %v1697_v7, 0.0 }
 0x136   : > { %671 = vadd.xlane.f32.xlu2 %v670_v9  ;;  %1470 = vpow2.f32 %v612_v8 }
 0x139   : > { %v558_v10 = vpop.xlane.xlu0 %557  ;;  %v1749_v53 = vpop.xlane.xlu2 %542 }
 0x13a   : > { %v592_v11 = vsub.f32 %v461_v52, %v558_v10 }
 0x13c   : > { %v614_v12 = vmul.f32 1.442695, %v592_v11  ;;  %v1701_v13 = vpop.eup %1470 }
 0x13d   : > { %v649_v15 = vsel %vm395_vm0, %v1701_v13, 0.0 }
 0x13e   : > { %1472 = vpow2.f32 %v614_v12  ;;  %650 = vadd.xlane.f32.xlu1 %v649_v15 }
 0x141   : > { %v573_v37 = vpop.xlane.xlu0 %572  ;;  %v1751_v54 = vpop.xlane.xlu2 %545 }
 0x142   : > { %v561_v16 = vpop.xlane.xlu1 %560  ;;  %v597_v39 = vsub.f32 %v1671_v41, %v573_v37 }
 0x143   : > { %v593_v17 = vsub.f32 %v464_v56, %v561_v16 }
 0x144   : > { %v1709_v19 = vpop.eup %1472  ;;  %v624_v42 = vmul.f32 1.442695, %v597_v39 }
 0x145   : > { %v616_v20 = vmul.f32 1.442695, %v593_v17  ;;  %v652_v21 = vsel %vm395_vm0, %v1709_v19, 0.0 }
 0x146   : > { %653 = vadd.xlane.f32.xlu0 %v652_v21  ;;  %578 = vmax.xlane.f32.xlu1 %v577_v18 }
 0x147   : > { %1474 = vpow2.f32 %v616_v20 }
 0x14a   : > { %v564_v23 = vpop.xlane.xlu1 %563 }
 0x14b   : > { %v594_v24 = vsub.f32 %v1656_v31, %v564_v23  ;;  %v583_v31 = vsel %vm395_vm0, %v1723_v34, -inf }
 0x14d   : > { %v618_v26 = vmul.f32 1.442695, %v594_v24  ;;  %v1718_v27 = vpop.eup %1474 }
 0x14e   : > { %581 = vmax.xlane.f32.xlu1 %v580_v25  ;;  %v655_v29 = vsel %vm395_vm0, %v1718_v27, 0.0 }
 0x14f   : > { %1476 = vpow2.f32 %v618_v26  ;;  %656 = vadd.xlane.f32.xlu0 %v655_v29  ;;  %v587_v26 = vsub.f32 %v1658_v32, %v1749_v53 }
 0x150   : > { %1478 = vpow2.f32 %v620_v36  ;;  %v394_v36 = vld [vmem:[%s1758_s11 + $0x18] sm:$0xff] }
 0x151   : > { %1480 = vpow2.f32 %v624_v42  ;;  %1041 = vmatpush.msrb.mxu3 %v394_v36  ;;  %v604_v46 = vmul.f32 1.442695, %v587_v26 }
 0x152   : > { %1482 = vpow2.f32 %v602_v48 }
 0x153   : > { %1042 = vmatpush.msrb.mxu3 %v393_v43 }
 0x155   : > { %v1727_v38 = vpop.eup %1476 }
 0x156   : > { %v658_v33 = vsel %vm395_vm0, %v1727_v38, 0.0  ;;  %584 = vmax.xlane.f32.xlu1 %v583_v31  ;;  %v1732_v45 = vpop.eup %1478 }
 0x157   : > { %659 = vadd.xlane.f32.xlu0 %v658_v33  ;;  %v661_v41 = vsel %vm395_vm0, %v1732_v45, 0.0  ;;  %v1739_v49 = vpop.eup %1480 }
 0x158   : > { %v667_v50 = vsel %vm395_vm0, %v1739_v49, 0.0  ;;  %v1745_v51 = vpop.eup %1482 }
 0x159   : > { %v634_v52 = vsel %vm395_vm0, %v1745_v51, 0.0 }
 0x15e   : > { %548 = vmax.xlane.f32.xlu1 %v547_v47 }
 0x15f   : > { %662 = vadd.xlane.f32.xlu0 %v661_v41 }
 0x166   : > { %668 = vadd.xlane.f32.xlu1 %v667_v50 }
 0x167   : > { %551 = vmax.xlane.f32.xlu0 %v550_v30 }
 0x16e   : > { %635 = vadd.xlane.f32.xlu1 %v634_v52 }
 0x199   : > { %v666_v55 = vpop.xlane.xlu2 %665 }
 0x19a   : > { %1484 = vrcp.f32 %v666_v55  ;;  %v833_v58 = vand.u32 2147483648, %v666_v55  ;;  %vm827_vm1 = vweird.f32 %v666_v55  ;;  %v831_v61 = vand.u32 2147483647, %v666_v55 }
 0x19c   : > { %v834_v1 = vor.u32 1.1754944e-38, %v833_v58  ;;  %vm832_vm4 = vcmp.eq.f32.partialorder %v831_v61, 8.507059e+37 }
 0x1a0   : > { %v1485_v56 = vpop.eup %1484 }
 0x1a1   : > { %v823_v57 = vmul.f32 %v1485_v56, %v666_v55  ;;  %vm828_vm2 = vweird.f32 %v1485_v56 }
 0x1a2   : > { %vm829_vm3 = vmor %vm827_vm1, %vm828_vm2 }
 0x1a3   : > { %v824_v59 = vsub.f32 1.0, %v823_v57 }
 0x1a5   : > { %v825_v62 = vmul.f32 %v1485_v56, %v824_v59 }
 0x1a7   : > { %v826_v2 = vadd.f32 %v1485_v56, %v825_v62 }
 0x1a9   : > { %v672_v3 = vpop.xlane.xlu2 %671  ;;  %v830_v4 = vsel %vm829_vm3, %v1485_v56, %v826_v2  ;;  %v588_v56 = vsub.f32 %v1664_v35, %v1751_v54 }
 0x1aa   : > { %1486 = vrcp.f32 %v672_v3  ;;  %v835_v5 = vsel %vm832_vm4, %v834_v1, %v830_v4  ;;  %vm855_vm5 = vweird.f32 %v672_v3  ;;  %v861_v10 = vand.u32 2147483648, %v672_v3 }
 0x1ab   : > { %v1770_v6 = vmul.f32 %v1693_v0, %v835_v5  ;;  %v859_v15 = vand.u32 2147483647, %v672_v3 }
 0x1ac   : > { %v862_v17 = vor.u32 1.1754944e-38, %v861_v10 }
 0x1ad   : > { %932 = vst.msk [vmem:[%s1767_s14 + $0x50] sm:$0xff] %vm395_vm0, %v1770_v6  ;;  %vm860_vm8 = vcmp.eq.f32.partialorder %v859_v15, 8.507059e+37 }
 0x1b0   : > { %v1487_v8 = vpop.eup %1486 }
 0x1b1   : > { %v851_v9 = vmul.f32 %v1487_v8, %v672_v3  ;;  %v651_v11 = vpop.xlane.xlu1 %650  ;;  %vm856_vm6 = vweird.f32 %v1487_v8 }
 0x1b2   : > { %1488 = vrcp.f32 %v651_v11  ;;  %vm857_vm7 = vmor %vm855_vm5, %vm856_vm6  ;;  %v763_v31 = vand.u32 2147483648, %v651_v11  ;;  %v761_v42 = vand.u32 2147483647, %v651_v11  ;;  %vm757_vm10 = vweird.f32 %v651_v11 }
 0x1b3   : > { %v852_v12 = vsub.f32 1.0, %v851_v9 }
 0x1b4   : > { %v764_v47 = vor.u32 1.1754944e-38, %v763_v31  ;;  %vm762_vm12 = vcmp.eq.f32.partialorder %v761_v42, 8.507059e+37 }
 0x1b5   : > { %v853_v16 = vmul.f32 %v1487_v8, %v852_v12 }
 0x1b7   : > { %v854_v18 = vadd.f32 %v1487_v8, %v853_v16 }
 0x1b8   : > { %v1489_v0 = vpop.eup %1488 }
 0x1b9   : > { %v858_v20 = vsel %vm857_vm7, %v1487_v8, %v854_v18  ;;  %v753_v21 = vmul.f32 %v1489_v0, %v651_v11  ;;  %v654_v23 = vpop.xlane.xlu0 %653  ;;  %v579_v24 = vpop.xlane.xlu1 %578  ;;  %vm758_vm9 = vweird.f32 %v1489_v0 }
 0x1ba   : > { %v863_v25 = vsel %vm860_vm8, %v862_v17, %v858_v20  ;;  %1490 = vrcp.f32 %v654_v23  ;;  %v599_v28 = vsub.f32 %v1703_v14, %v579_v24  ;;  %vm759_vm11 = vmor %vm757_vm10, %vm758_vm9  ;;  %v777_v57 = vand.u32 2147483648, %v654_v23 }
 0x1bb   : > { %v754_v29 = vsub.f32 1.0, %v753_v21  ;;  %v1780_v37 = vmul.f32 %v1697_v7, %v863_v25  ;;  %v775_v62 = vand.u32 2147483647, %v654_v23  ;;  %vm771_vm14 = vweird.f32 %v654_v23 }
 0x1bc   : > { %v628_v39 = vmul.f32 1.442695, %v599_v28  ;;  %v778_v35 = vor.u32 1.1754944e-38, %v777_v57 }
 0x1bd   : > { %v755_v33 = vmul.f32 %v1489_v0, %v754_v29  ;;  %934 = vst.msk [vmem:[%s1767_s14 + $0x60] sm:$0xff] %vm395_vm0, %v1780_v37  ;;  %vm776_vm1 = vcmp.eq.f32.partialorder %v775_v62, 8.507059e+37 }
 0x1be   : > { %1492 = vpow2.f32 %v628_v39 }
 0x1bf   : > { %v756_v32 = vadd.f32 %v1489_v0, %v755_v33  ;;  %1494 = vpow2.f32 %v604_v46 }
 0x1c0   : > { %v1491_v14 = vpop.eup %1490 }
 0x1c1   : > { %v767_v7 = vmul.f32 %v1491_v14, %v654_v23  ;;  %v582_v41 = vpop.xlane.xlu1 %581  ;;  %v760_v48 = vsel %vm759_vm11, %v1489_v0, %v756_v32  ;;  %vm772_vm13 = vweird.f32 %v1491_v14 }
 0x1c2   : > { %v657_v50 = vpop.xlane.xlu0 %656  ;;  %v600_v30 = vsub.f32 %v1713_v22, %v582_v41  ;;  %v765_v52 = vsel %vm762_vm12, %v764_v47, %v760_v48  ;;  %vm773_vm15 = vmor %vm771_vm14, %vm772_vm13 }
 0x1c3   : > { %v768_v53 = vsub.f32 1.0, %v767_v7  ;;  %1496 = vrcp.f32 %v657_v50  ;;  %v911_v59 = vmul.f32 %v1701_v13, %v765_v52  ;;  %v606_v13 = vmul.f32 1.442695, %v588_v56 }
 0x1c4   : > { %v1787_v55 = vpop.eup %1492  ;;  %v630_v58 = vmul.f32 1.442695, %v600_v30  ;;  %v791_v15 = vand.u32 2147483648, %v657_v50  ;;  %vm785_vm3 = vweird.f32 %v657_v50 }
 0x1c5   : > { %v769_v60 = vmul.f32 %v1491_v14, %v768_v53  ;;  %v673_v61 = vsel %vm395_vm0, %v1787_v55, 0.0  ;;  %927 = vst.msk [vmem:[%s1767_s14 + $0x28] sm:$0xff] %vm395_vm0, %v911_v59  ;;  %1408 = vmatmul.msk.f32.vlgmr.msra.gmra.mxu3 %vm395_vm0, %v911_v59  ;;  %v1797_v63 = vpop.eup %1494 }
 0x1c6   : > { %1498 = vpow2.f32 %v630_v58  ;;  %674 = vadd.xlane.f32.xlu0 %v673_v61  ;;  %v637_v16 = vsel %vm395_vm0, %v1797_v63, 0.0  ;;  %v792_v20 = vor.u32 1.1754944e-38, %v791_v15 }
 0x1c7   : > { %v770_v22 = vadd.f32 %v1491_v14, %v769_v60 }
 0x1c9   : > { %v1497_v54 = vpop.eup %1496  ;;  %v585_v1 = vpop.xlane.xlu1 %584  ;;  %v774_v2 = vsel %vm773_vm15, %v1491_v14, %v770_v22 }
 0x1ca   : > { %v781_v3 = vmul.f32 %v1497_v54, %v657_v50  ;;  %v660_v4 = vpop.xlane.xlu0 %659  ;;  %v601_v5 = vsub.f32 %v1723_v34, %v585_v1  ;;  %v779_v8 = vsel %vm776_vm1, %v778_v35, %v774_v2  ;;  %vm786_vm2 = vweird.f32 %v1497_v54 }
 0x1cb   : > { %1500 = vrcp.f32 %v660_v4  ;;  %v912_v12 = vmul.f32 %v1709_v19, %v779_v8  ;;  %v789_v34 = vand.u32 2147483647, %v657_v50  ;;  %vm787_vm4 = vmor %vm785_vm3, %vm786_vm2  ;;  %v805_v46 = vand.u32 2147483648, %v660_v4 }
 0x1cc   : > { %v1800_v9 = vpop.eup %1498  ;;  %v782_v10 = vsub.f32 1.0, %v781_v3  ;;  %v632_v11 = vmul.f32 1.442695, %v601_v5  ;;  %1502 = vpow2.f32 %v606_v13  ;;  %v803_v32 = vand.u32 2147483647, %v660_v4 }
 0x1cd   : > { %v676_v17 = vsel %vm395_vm0, %v1800_v9, 0.0  ;;  %928 = vst.msk [vmem:[%s1767_s14 + $0x30] sm:$0xff] %vm395_vm0, %v912_v12  ;;  %1409 = vmatmul.msk.f32.gmra.mxu3 %vm395_vm0, %v912_v12  ;;  %vm790_vm5 = vcmp.eq.f32.partialorder %v789_v34, 8.507059e+37  ;;  %vm799_vm7 = vweird.f32 %v660_v4  ;;  %v806_v7 = vor.u32 1.1754944e-38, %v805_v46 }
 0x1ce   : > { %v783_v18 = vmul.f32 %v1497_v54, %v782_v10  ;;  %1504 = vpow2.f32 %v632_v11  ;;  %638 = vadd.xlane.f32.xlu0 %v637_v16  ;;  %677 = vadd.xlane.f32.xlu2 %v676_v17  ;;  %vm804_vm9 = vcmp.eq.f32.partialorder %v803_v32, 8.507059e+37 }
 0x1d0   : > { %v784_v19 = vadd.f32 %v1497_v54, %v783_v18 }
 0x1d1   : > { %v1501_v0 = vpop.eup %1500  ;;  %v549_v21 = vpop.xlane.xlu1 %548 }
 0x1d2   : > { %v795_v23 = vmul.f32 %v1501_v0, %v660_v4  ;;  %v663_v24 = vpop.xlane.xlu0 %662  ;;  %v589_v25 = vsub.f32 %v1669_v40, %v549_v21  ;;  %v788_v26 = vsel %vm787_vm4, %v1497_v54, %v784_v19  ;;  %v1811_v28 = vpop.eup %1502  ;;  %vm800_vm6 = vweird.f32 %v1501_v0 }
 0x1d3   : > { %1506 = vrcp.f32 %v663_v24  ;;  %v793_v29 = vsel %vm790_vm5, %v792_v20, %v788_v26  ;;  %v640_v40 = vsel %vm395_vm0, %v1811_v28, 0.0  ;;  %vm801_vm8 = vmor %vm799_vm7, %vm800_vm6  ;;  %v819_v61 = vand.u32 2147483648, %v663_v24 }
 0x1d4   : > { %v1813_v36 = vpop.eup %1504  ;;  %v796_v31 = vsub.f32 1.0, %v795_v23  ;;  %v608_v39 = vmul.f32 1.442695, %v589_v25  ;;  %v913_v33 = vmul.f32 %v1718_v27, %v793_v29  ;;  %vm813_vm11 = vweird.f32 %v663_v24 }
 0x1d5   : > { %v679_v42 = vsel %vm395_vm0, %v1813_v36, 0.0 }
 0x1d6   : > { %v797_v43 = vmul.f32 %v1501_v0, %v796_v31  ;;  %1508 = vpow2.f32 %v608_v39  ;;  %929 = vst.msk [vmem:[%s1767_s14 + $0x38] sm:$0xff] %vm395_vm0, %v913_v33  ;;  %1410 = vmatmul.msk.f32.gmra.mxu3 %vm395_vm0, %v913_v33  ;;  %680 = vadd.xlane.f32.xlu1 %v679_v42 }
 0x1d7   : > { %641 = vadd.xlane.f32.xlu2 %v640_v40 }
 0x1d8   : > { %v798_v14 = vadd.f32 %v1501_v0, %v797_v43 }
 0x1d9   : > { %v1507_v47 = vpop.eup %1506  ;;  %v669_v27 = vpop.xlane.xlu1 %668 }
 0x1da   : > { %v809_v41 = vmul.f32 %v1507_v47, %v663_v24  ;;  %v552_v48 = vpop.xlane.xlu0 %551  ;;  %1510 = vrcp.f32 %v669_v27  ;;  %v802_v30 = vsel %vm801_vm8, %v1501_v0, %v798_v14  ;;  %vm814_vm10 = vweird.f32 %v1507_v47 }
 0x1db   : > { %v590_v50 = vsub.f32 %v1675_v44, %v552_v48  ;;  %v807_v56 = vsel %vm804_vm9, %v806_v7, %v802_v30  ;;  %v817_v44 = vand.u32 2147483647, %v663_v24  ;;  %vm815_vm12 = vmor %vm813_vm11, %vm814_vm10  ;;  %v847_v2 = vand.u32 2147483648, %v669_v27 }
 0x1dc   : > { %v1824_v52 = vpop.eup %1508  ;;  %v810_v53 = vsub.f32 1.0, %v809_v41  ;;  %v914_v58 = vmul.f32 %v1727_v38, %v807_v56  ;;  %v820_v38 = vor.u32 1.1754944e-38, %v819_v61  ;;  %v845_v10 = vand.u32 2147483647, %v669_v27 }
 0x1dd   : > { %v610_v57 = vmul.f32 1.442695, %v590_v50  ;;  %v643_v59 = vsel %vm395_vm0, %v1824_v52, 0.0  ;;  %vm818_vm13 = vcmp.eq.f32.partialorder %v817_v44, 8.507059e+37  ;;  %vm841_vm15 = vweird.f32 %v669_v27 }
 0x1de   : > { %v811_v60 = vmul.f32 %v1507_v47, %v810_v53  ;;  %644 = vadd.xlane.f32.xlu0 %v643_v59  ;;  %930 = vst.msk [vmem:[%s1767_s14 + $0x40] sm:$0xff] %vm395_vm0, %v914_v58  ;;  %1411 = vmatmul.msk.f32.vlgmr.msrb.gmra.mxu3 %vm395_vm0, %v914_v58  ;;  %v848_v16 = vor.u32 1.1754944e-38, %v847_v2  ;;  %vm846_vm2 = vcmp.eq.f32.partialorder %v845_v10, 8.507059e+37 }
 0x1df   : > { %1512 = vpow2.f32 %v610_v57 }
 0x1e0   : > { %v1511_v62 = vpop.eup %1510  ;;  %v812_v22 = vadd.f32 %v1507_v47, %v811_v60 }
 0x1e1   : > { %v837_v35 = vmul.f32 %v1511_v62, %v669_v27  ;;  %v636_v54 = vpop.xlane.xlu1 %635  ;;  %vm842_vm14 = vweird.f32 %v1511_v62 }
 0x1e2   : > { %1514 = vrcp.f32 %v636_v54  ;;  %v816_v1 = vsel %vm815_vm12, %v1507_v47, %v812_v22  ;;  %vm843_vm1 = vmor %vm841_vm15, %vm842_vm14  ;;  %v693_v0 = vand.u32 2147483648, %v636_v54  ;;  %v691_v21 = vand.u32 2147483647, %v636_v54 }
 0x1e3   : > { %v838_v13 = vsub.f32 1.0, %v837_v35  ;;  %v821_v3 = vsel %vm818_vm13, %v820_v38, %v816_v1  ;;  %vm687_vm4 = vweird.f32 %v636_v54  ;;  %v1127_v38 = vld [vmem:[%s1996_s3 + $0x10] sm:$0xff] }
 0x1e4   : > { %v915_v8 = vmul.f32 %v1732_v45, %v821_v3  ;;  %v694_v24 = vor.u32 1.1754944e-38, %v693_v0  ;;  %vm692_vm6 = vcmp.eq.f32.partialorder %v691_v21, 8.507059e+37 }
 0x1e5   : > { %v1832_v4 = vpop.eup %1512  ;;  %v839_v5 = vmul.f32 %v1511_v62, %v838_v13 }
 0x1e6   : > { %v646_v11 = vsel %vm395_vm0, %v1832_v4, 0.0  ;;  %931 = vst.msk [vmem:[%s1767_s14 + $0x48] sm:$0xff] %vm395_vm0, %v915_v8  ;;  %1412 = vmatmul.msk.f32.gmra.mxu3 %vm395_vm0, %v915_v8 }
 0x1e7   : > { %647 = vadd.xlane.f32.xlu1 %v646_v11  ;;  %v840_v12 = vadd.f32 %v1511_v62, %v839_v5 }
 0x1e8   : > { %v1515_v15 = vpop.eup %1514 }
 0x1e9   : > { %v683_v17 = vmul.f32 %v1515_v15, %v636_v54  ;;  %v844_v18 = vsel %vm843_vm1, %v1511_v62, %v840_v12  ;;  %vm688_vm3 = vweird.f32 %v1515_v15 }
 0x1ea   : > { %v849_v45 = vsel %vm846_vm2, %v848_v16, %v844_v18  ;;  %vm689_vm5 = vmor %vm687_vm4, %vm688_vm3 }
 0x1eb   : > { %v684_v34 = vsub.f32 1.0, %v683_v17  ;;  %v917_v19 = vmul.f32 %v1739_v49, %v849_v45 }
 0x1ed   : > { %v685_v20 = vmul.f32 %v1515_v15, %v684_v34  ;;  %933 = vst.msk [vmem:[%s1767_s14 + $0x58] sm:$0xff] %vm395_vm0, %v917_v19 }
 0x1ee   : > { %1413 = vmatmul.msk.f32.gmra.mxu3 %vm395_vm0, %v1770_v6 }
 0x1ef   : > { %v686_v23 = vadd.f32 %v1515_v15, %v685_v20 }
 0x1f1   : > { %v690_v25 = vsel %vm689_vm5, %v1515_v15, %v686_v23 }
 0x1f2   : > { %v695_v26 = vsel %vm692_vm6, %v694_v24, %v690_v25 }
 0x1f3   : > { %v906_v29 = vmul.f32 %v1745_v51, %v695_v26 }
 0x1f5   : > { %922 = vst.msk [vmem:[%s1767_s14] sm:$0xff] %vm395_vm0, %v906_v29  ;;  %1403 = vmatmul.msk.f32.vlgmr.msrb.gmra.mxu0 %vm395_vm0, %v906_v29 }
 0x1f6   : > { %1414 = vmatmul.msk.f32.gmra.mxu3 %vm395_vm0, %v917_v19 }
 0x1fe   : > { %1415 = vmatmul.msk.f32.gmra.mxu3 %vm395_vm0, %v1780_v37 }
 0x239   : > { %v675_v49 = vpop.xlane.xlu0 %674 }
 0x23a   : > { %1516 = vrcp.f32 %v675_v49  ;;  %v875_v51 = vand.u32 2147483648, %v675_v49  ;;  %vm869_vm8 = vweird.f32 %v675_v49  ;;  %v873_v40 = vand.u32 2147483647, %v675_v49 }
 0x23c   : > { %v876_v48 = vor.u32 1.1754944e-38, %v875_v51  ;;  %vm874_vm10 = vcmp.eq.f32.partialorder %v873_v40, 8.507059e+37 }
 0x240   : > { %v1517_v31 = vpop.eup %1516 }
 0x241   : > { %v865_v6 = vmul.f32 %v1517_v31, %v675_v49  ;;  %v639_v39 = vpop.xlane.xlu0 %638  ;;  %v678_v33 = vpop.xlane.xlu2 %677  ;;  %vm870_vm7 = vweird.f32 %v1517_v31 }
 0x242   : > { %1518 = vrcp.f32 %v639_v39  ;;  %vm1852_vm9 = vmor %vm869_vm8, %vm870_vm7  ;;  %v707_v59 = vand.u32 2147483648, %v639_v39  ;;  %v889_v44 = vand.u32 2147483648, %v678_v33  ;;  %v705_v62 = vand.u32 2147483647, %v639_v39 }
 0x243   : > { %v866_v42 = vsub.f32 1.0, %v865_v6  ;;  %1520 = vrcp.f32 %v678_v33  ;;  %vm701_vm12 = vweird.f32 %v639_v39  ;;  %v887_v35 = vand.u32 2147483647, %v678_v33 }
 0x244   : > { %vm883_vm15 = vweird.f32 %v678_v33  ;;  %v890_v10 = vor.u32 1.1754944e-38, %v889_v44  ;;  %vm706_vm1 = vcmp.eq.f32.partialorder %v705_v62, 8.507059e+37 }
 0x245   : > { %v867_v43 = vmul.f32 %v1517_v31, %v866_v42  ;;  %vm888_vm3 = vcmp.eq.f32.partialorder %v887_v35, 8.507059e+37 }
 0x247   : > { %v868_v46 = vadd.f32 %v1517_v31, %v867_v43 }
 0x248   : > { %v1519_v32 = vpop.eup %1518  ;;  %v994_v27 = vpop.f32.mrf.mxu3 }
 0x249   : > { %v1521_v37 = vpop.eup %1520  ;;  %v697_v47 = vmul.f32 %v1519_v32, %v639_v39  ;;  %v1856_v7 = vpop.xlane.xlu1 %680  ;;  %v872_v41 = vsel %vm1852_vm9, %v1517_v31, %v868_v46  ;;  %1073 = vst.msk [vmem:[#allocation2 + $0x28] sm:$0xff] %vm395_vm0, %v994_v27  ;;  %vm702_vm11 = vweird.f32 %v1519_v32 }
 0x24a   : > { %v879_v50 = vmul.f32 %v1521_v37, %v678_v33  ;;  %v1861_v30 = vpop.xlane.xlu2 %641  ;;  %1522 = vrcp.f32 %v1856_v7  ;;  %v877_v57 = vsel %vm874_vm10, %v876_v48, %v872_v41  ;;  %vm884_vm13 = vweird.f32 %v1521_v37  ;;  %vm1869_vm14 = vmor %vm701_vm12, %vm702_vm11 }
 0x24b   : > { %v698_v53 = vsub.f32 1.0, %v697_v47  ;;  %1524 = vrcp.f32 %v1861_v30  ;;  %v919_v60 = vmul.f32 %v1787_v55, %v877_v57  ;;  %v708_v55 = vor.u32 1.1754944e-38, %v707_v59  ;;  %vm885_vm2 = vmor %vm883_vm15, %vm884_vm13 }
 0x24c   : > { %v880_v56 = vsub.f32 1.0, %v879_v50  ;;  %v903_v18 = vand.u32 2147483648, %v1856_v7  ;;  %v901_v20 = vand.u32 2147483647, %v1856_v7  ;;  %v721_v23 = vand.u32 2147483648, %v1861_v30 }
 0x24d   : > { %v699_v58 = vmul.f32 %v1519_v32, %v698_v53  ;;  %935 = vst.msk [vmem:[%s1767_s14 + $0x68] sm:$0xff] %vm395_vm0, %v919_v60  ;;  %1416 = vmatmul.msk.f32.gmra.mxu3 %vm395_vm0, %v919_v60  ;;  %v719_v24 = vand.u32 2147483647, %v1861_v30  ;;  %vm897_vm6 = vweird.f32 %v1856_v7  ;;  %vm715_vm7 = vweird.f32 %v1861_v30 }
 0x24e   : > { %v881_v61 = vmul.f32 %v1521_v37, %v880_v56  ;;  %v904_v26 = vor.u32 1.1754944e-38, %v903_v18  ;;  %vm902_vm10 = vcmp.eq.f32.partialorder %v901_v20, 8.507059e+37  ;;  %v722_v6 = vor.u32 1.1754944e-38, %v721_v23 }
 0x24f   : > { %v700_v22 = vadd.f32 %v1519_v32, %v699_v58  ;;  %vm720_vm11 = vcmp.eq.f32.partialorder %v719_v24, 8.507059e+37  ;;  %v1465_v24 = vld [vmem:[%s1997_s4] ss:$0 sm:$0xff] }
 0x250   : > { %v1523_v54 = vpop.eup %1522  ;;  %v882_v13 = vadd.f32 %v1521_v37, %v881_v61  ;;  %v997_v3 = vpop.f32.mrf.mxu3 }
 0x251   : > { %v1525_v1 = vpop.eup %1524  ;;  %v893_v2 = vmul.f32 %v1523_v54, %v1856_v7  ;;  %v1874_v5 = vpop.xlane.xlu0 %644  ;;  %v704_v8 = vsel %vm1869_vm14, %v1519_v32, %v700_v22  ;;  %1074 = vst.msk [vmem:[#allocation2 + $0x30] sm:$0xff] %vm395_vm0, %v997_v3  ;;  %vm898_vm4 = vweird.f32 %v1523_v54 }
 0x252   : > { %v711_v11 = vmul.f32 %v1525_v1, %v1861_v30  ;;  %1526 = vrcp.f32 %v1874_v5  ;;  %v709_v15 = vsel %vm706_vm1, %v708_v55, %v704_v8  ;;  %v886_v16 = vsel %vm885_vm2, %v1521_v37, %v882_v13  ;;  %vm899_vm8 = vmor %vm897_vm6, %vm898_vm4  ;;  %v1126_v13 = vld [vmem:[%s1996_s3 + $0x8] sm:$0xff] }
 0x253   : > { %v894_v12 = vsub.f32 1.0, %v893_v2  ;;  %v907_v45 = vmul.f32 %v1797_v63, %v709_v15  ;;  %v891_v34 = vsel %vm888_vm3, %v890_v10, %v886_v16  ;;  %vm716_vm5 = vweird.f32 %v1525_v1 }
 0x254   : > { %v712_v17 = vsub.f32 1.0, %v711_v11  ;;  %v920_v0 = vmul.f32 %v1800_v9, %v891_v34  ;;  %vm717_vm9 = vmor %vm715_vm7, %vm716_vm5  ;;  %v735_v51 = vand.u32 2147483648, %v1874_v5  ;;  %v733_v37 = vand.u32 2147483647, %v1874_v5 }
 0x255   : > { %v895_v19 = vmul.f32 %v1523_v54, %v894_v12  ;;  %923 = vst.msk [vmem:[%s1767_s14 + $0x8] sm:$0xff] %vm395_vm0, %v907_v45  ;;  %1404 = vmatmul.msk.f32.gmra.mxu0 %vm395_vm0, %v907_v45  ;;  %vm729_vm13 = vweird.f32 %v1874_v5  ;;  %vm1108_vm5 = vcmask 261248   ;;  %vm1133_vm6 = vcmask 261120  }
 0x256   : > { %v713_v21 = vmul.f32 %v1525_v1, %v712_v17  ;;  %936 = vst.msk [vmem:[%s1767_s14 + $0x70] sm:$0xff] %vm395_vm0, %v920_v0  ;;  %1417 = vmatmul.msk.f32.gmra.mxu3 %vm395_vm0, %v920_v0  ;;  %v736_v27 = vor.u32 1.1754944e-38, %v735_v51  ;;  %vm734_vm15 = vcmp.eq.f32.partialorder %v733_v37, 8.507059e+37 }
 0x257   : > { %v896_v63 = vadd.f32 %v1523_v54, %v895_v19 }
 0x258   : > { %v1527_v9 = vpop.eup %1526  ;;  %v714_v25 = vadd.f32 %v1525_v1, %v713_v21 }
 0x259   : > { %v725_v29 = vmul.f32 %v1527_v9, %v1874_v5  ;;  %v1000_v49 = vpop.f32.mrf.mxu3  ;;  %v900_v31 = vsel %vm899_vm8, %v1523_v54, %v896_v63  ;;  %vm730_vm12 = vweird.f32 %v1527_v9 }
 0x25a   : > { %1075 = vst.msk [vmem:[#allocation2 + $0x38] sm:$0xff] %vm395_vm0, %v1000_v49  ;;  %v648_v39 = vpop.xlane.xlu1 %647  ;;  %v718_v33 = vsel %vm717_vm9, %v1525_v1, %v714_v25  ;;  %v905_v42 = vsel %vm902_vm10, %v904_v26, %v900_v31  ;;  %vm731_vm14 = vmor %vm729_vm13, %vm730_vm12  ;;  %v1125_v1 = vld [vmem:[%s1996_s3] sm:$0xff] }
 0x25b   : > { %v726_v43 = vsub.f32 1.0, %v725_v29  ;;  %1528 = vrcp.f32 %v648_v39  ;;  %v723_v46 = vsel %vm720_vm11, %v722_v6, %v718_v33  ;;  %v921_v40 = vmul.f32 %v1813_v36, %v905_v42 }
 0x25c   : > { %v908_v14 = vmul.f32 %v1811_v28, %v723_v46  ;;  %v749_v53 = vand.u32 2147483648, %v648_v39  ;;  %v747_v57 = vand.u32 2147483647, %v648_v39  ;;  %vm743_vm2 = vweird.f32 %v648_v39 }
 0x25d   : > { %v727_v32 = vmul.f32 %v1527_v9, %v726_v43  ;;  %937 = vst.msk [vmem:[%s1767_s14 + $0x78] sm:$0xff] %vm395_vm0, %v921_v40 }
 0x25e   : > { %924 = vst.msk [vmem:[%s1767_s14 + $0x10] sm:$0xff] %vm395_vm0, %v908_v14  ;;  %1405 = vmatmul.msk.f32.vlgmr.msrb.gmra.mxu1 %vm395_vm0, %v908_v14  ;;  %1418 = vmatmul.msk.f32.gmra.mxu3 %vm395_vm0, %v921_v40  ;;  %v750_v59 = vor.u32 1.1754944e-38, %v749_v53  ;;  %vm748_vm4 = vcmp.eq.f32.partialorder %v747_v57, 8.507059e+37 }
 0x25f   : > { %v728_v47 = vadd.f32 %v1527_v9, %v727_v32 }
 0x261   : > { %v1529_v36 = vpop.eup %1528  ;;  %v732_v7 = vsel %vm731_vm14, %v1527_v9, %v728_v47  ;;  %v1044_v41 = vpop.f32.mrf.mxu3 }
 0x262   : > { %v739_v28 = vmul.f32 %v1529_v36, %v648_v39  ;;  %v737_v48 = vsel %vm734_vm15, %v736_v27, %v732_v7  ;;  %1084 = vrot.lane.b32.xlu2 %v1044_v41, %s1554_s15  ;;  %vm744_vm1 = vweird.f32 %v1529_v36 }
 0x263   : > { %v909_v50 = vmul.f32 %v1824_v52, %v737_v48  ;;  %vm745_vm3 = vmor %vm743_vm2, %vm744_vm1 }
 0x264   : > { %v740_v30 = vsub.f32 1.0, %v739_v28 }
 0x265   : > { %925 = vst.msk [vmem:[%s1767_s14 + $0x18] sm:$0xff] %vm395_vm0, %v909_v50 }
 0x266   : > { %v741_v56 = vmul.f32 %v1529_v36, %v740_v30  ;;  %1406 = vmatmul.msk.f32.gmra.mxu1 %vm395_vm0, %v909_v50 }
 0x268   : > { %v742_v58 = vadd.f32 %v1529_v36, %v741_v56 }
 0x269   : > { %v1047_v60 = vpop.f32.mrf.mxu3 }
 0x26a   : > { %v746_v61 = vsel %vm745_vm3, %v1529_v36, %v742_v58  ;;  %1086 = vrot.lane.b32.xlu0 %v1047_v60, %s1554_s15 }
 0x26b   : > { %v751_v52 = vsel %vm748_vm4, %v750_v59, %v746_v61 }
 0x26c   : > { %v910_v44 = vmul.f32 %v1832_v4, %v751_v52  ;;  %v1128_v4 = vld [vmem:[%s1996_s3 + $0x18] sm:$0xff] }
 0x26d   : > { %1170 = vmatpush.msrb.mxu2 %v1128_v4 }
 0x26e   : > { %926 = vst.msk [vmem:[%s1767_s14 + $0x20] sm:$0xff] %vm395_vm0, %v910_v44  ;;  %1407 = vmatmul.msk.f32.vlgmr.msra.gmra.mxu2 %vm395_vm0, %v910_v44 }
 0x26f   : > { %1171 = vmatpush.msrb.mxu2 %v1127_v38 }
 0x271   : > { %v1050_v62 = vpop.f32.mrf.mxu3  ;;  %1172 = vmatpush.msrb.mxu2 %v1126_v13 }
 0x272   : > { %v979_v22 = vpop.f32.mrf.mxu0  ;;  %1088 = vrot.lane.b32.xlu1 %v1050_v62, %s1554_s15 }
 0x273   : > { %1068 = vst.msk [vmem:[#allocation2] sm:$0xff] %vm395_vm0, %v979_v22  ;;  %1173 = vmatpush.msrb.mxu2 %v1125_v1 }
 0x279   : > { %v1053_v35 = vpop.f32.mrf.mxu3 }
 0x27a   : > { %1090 = vrot.lane.b32.xlu2 %v1053_v35, %s1554_s15 }
 0x281   : > { %v1056_v54 = vpop.f32.mrf.mxu3 }
 0x282   : > { %1092 = vrot.lane.b32.xlu0 %v1056_v54, %s1554_s15 }
 0x2bc   : > { %v1085_v55 = vpop.permute.xlu2 %1084 }
 0x2bd   : > { %1109 = vst.msk [vmem:[#allocation2] sm:$0xff] %vm1108_vm5, %v1085_v55 }
 0x2c4   : > { %v1117_v2 = vld [vmem:[#allocation2] sm:$0xff] }
 0x2c5   : > { %1419 = vmatmul.msk.f32.vlgmr.msrb.gmra.mxu2 %vm1133_vm6, %v1117_v2 }
 0x2d0   : > { %v1059_v3 = vpop.f32.mrf.mxu3 }
 0x2d1   : > { %1094 = vrot.lane.b32.xlu2 %v1059_v3, %s1554_s15 }
 0x2d2   : > { %v982_v5 = vpop.f32.mrf.mxu0 }
 0x2d3   : > { %1069 = vst.msk [vmem:[#allocation2 + $0x8] sm:$0xff] %vm395_vm0, %v982_v5 }
 0x2d4   : > { %v1091_v16 = vpop.permute.xlu2 %1090 }
 0x2d9   : > { %v1062_v8 = vpop.f32.mrf.mxu3 }
 0x2da   : > { %1096 = vrot.lane.b32.xlu1 %v1062_v8, %s1554_s15 }
 0x2db   : > { %v985_v10 = vpop.f32.mrf.mxu1 }
 0x2dc   : > { %1070 = vst.msk [vmem:[#allocation2 + $0x10] sm:$0xff] %vm395_vm0, %v985_v10  ;;  %v1087_v11 = vpop.permute.xlu0 %1086 }
 0x2dd   : > { %1110 = vst.msk [vmem:[#allocation2 + $0x8] sm:$0xff] %vm1108_vm5, %v1087_v11 }
 0x2e1   : > { %v1065_v12 = vpop.f32.mrf.mxu3 }
 0x2e2   : > { %1098 = vrot.lane.b32.xlu0 %v1065_v12, %s1554_s15 }
 0x2e3   : > { %v988_v15 = vpop.f32.mrf.mxu1 }
 0x2e4   : > { %1071 = vst.msk [vmem:[#allocation2 + $0x18] sm:$0xff] %vm395_vm0, %v988_v15  ;;  %v1089_v17 = vpop.permute.xlu1 %1088  ;;  %v1118_v18 = vld [vmem:[#allocation2 + $0x8] sm:$0xff] }
 0x2e5   : > { %1112 = vst.msk [vmem:[#allocation2 + $0x18] sm:$0xff] %vm1108_vm5, %v1091_v16  ;;  %1420 = vmatmul.msk.f32.gmra.mxu2 %vm1133_vm6, %v1118_v18 }
 0x2e6   : > { %1111 = vst.msk [vmem:[#allocation2 + $0x10] sm:$0xff] %vm1108_vm5, %v1089_v17 }
 0x2ec   : > { %v1120_v0 = vld [vmem:[#allocation2 + $0x18] sm:$0xff] }
 0x2ed   : > { %v1119_v45 = vld [vmem:[#allocation2 + $0x10] sm:$0xff] }
 0x2ee   : > { %1421 = vmatmul.msk.f32.gmra.mxu2 %vm1133_vm6, %v1119_v45 }
 0x2f1   : > { %v991_v34 = vpop.f32.mrf.mxu2 }
 0x2f2   : > { %1072 = vst.msk [vmem:[#allocation2 + $0x20] sm:$0xff] %vm395_vm0, %v991_v34 }
 0x2f4   : > { %v1093_v19 = vpop.permute.xlu0 %1092 }
 0x2f5   : > { %1113 = vst.msk [vmem:[#allocation2 + $0x20] sm:$0xff] %vm1108_vm5, %v1093_v19 }
 0x2f6   : > { %1422 = vmatmul.msk.f32.gmra.mxu2 %vm1133_vm6, %v1120_v0 }
 0x2fc   : > { %v1121_v20 = vld [vmem:[#allocation2 + $0x20] sm:$0xff] }
 0x2fe   : > { %1423 = vmatmul.msk.f32.gmra.mxu2 %vm1133_vm6, %v1121_v20 }
 0x32b   : > { %v1095_v21 = vpop.permute.xlu2 %1094 }
 0x32c   : > { %1114 = vst.msk [vmem:[#allocation2 + $0x28] sm:$0xff] %vm1108_vm5, %v1095_v21 }
 0x333   : > { %v1122_v23 = vld [vmem:[#allocation2 + $0x28] sm:$0xff] }
 0x334   : > { %1424 = vmatmul.msk.f32.gmra.mxu2 %vm1133_vm6, %v1122_v23 }
 0x348   : > { %v1175_v63 = vpop.f32.mrf.mxu2 }
 0x349   : > { %v1176_v9 = vadd.f32 %v1465_v24, %v1175_v63 }
 0x34b   : > { %1199 = vst.msk [vmem:[%s1962_s9] sm:$0xff] %vm1133_vm6, %v1176_v9 }
 0x34c   : > { %v1097_v25 = vpop.permute.xlu1 %1096 }
 0x34d   : > { %1115 = vst.msk [vmem:[#allocation2 + $0x30] sm:$0xff] %vm1108_vm5, %v1097_v25 }
 0x354   : > { %v1099_v26 = vpop.permute.xlu0 %1098  ;;  %v1123_v29 = vld [vmem:[#allocation2 + $0x30] sm:$0xff] }
 0x355   : > { %1116 = vst.msk [vmem:[#allocation2 + $0x38] sm:$0xff] %vm1108_vm5, %v1099_v26  ;;  %1425 = vmatmul.msk.f32.gmra.mxu2 %vm1133_vm6, %v1123_v29 }
 0x35c   : > { %v1124_v49 = vld [vmem:[#allocation2 + $0x38] sm:$0xff] }
 0x35d   : > { %1426 = vmatmul.msk.f32.gmra.mxu2 %vm1133_vm6, %v1124_v49 }
 0x368   : > { %v1178_v31 = vpop.f32.mrf.mxu2 }
 0x369   : > { %v1179_v6 = vadd.f32 %v1465_v24, %v1178_v31 }
 0x36b   : > { %1200 = vst.msk [vmem:[%s1962_s9 + $0x8] sm:$0xff] %vm1133_vm6, %v1179_v6 }
 0x371   : > { %v1181_v39 = vpop.f32.mrf.mxu2 }
 0x372   : > { %v1182_v33 = vadd.f32 %v1465_v24, %v1181_v39 }
 0x374   : > { %1201 = vst.msk [vmem:[%s1962_s9 + $0x10] sm:$0xff] %vm1133_vm6, %v1182_v33 }
 0x379   : > { %v1184_v42 = vpop.f32.mrf.mxu2 }
 0x37a   : > { %v1185_v43 = vadd.f32 %v1465_v24, %v1184_v42 }
 0x37c   : > { %1202 = vst.msk [vmem:[%s1962_s9 + $0x18] sm:$0xff] %vm1133_vm6, %v1185_v43 }
 0x381   : > { %v1187_v51 = vpop.f32.mrf.mxu2 }
 0x382   : > { %v1188_v46 = vadd.f32 %v1465_v24, %v1187_v51 }
 0x384   : > { %1203 = vst.msk [vmem:[%s1962_s9 + $0x20] sm:$0xff] %vm1133_vm6, %v1188_v46 }
 0x3b7   : > { %v1190_v40 = vpop.f32.mrf.mxu2 }
 0x3b8   : > { %v1191_v32 = vadd.f32 %v1465_v24, %v1190_v40 }
 0x3ba   : > { %1204 = vst.msk [vmem:[%s1962_s9 + $0x28] sm:$0xff] %vm1133_vm6, %v1191_v32 }
 0x3d8   : > { %v1193_v14 = vpop.f32.mrf.mxu2 }
 0x3d9   : > { %v1194_v37 = vadd.f32 %v1465_v24, %v1193_v14 }
 0x3db   : > { %1205 = vst.msk [vmem:[%s1962_s9 + $0x30] sm:$0xff] %vm1133_vm6, %v1194_v37 }
 0x3e0   : > { %v1196_v47 = vpop.f32.mrf.mxu2 }
 0x3e1   : > { %v1197_v27 = vadd.f32 %v1465_v24, %v1196_v47 }
 0x3e3   : > { %1206 = vst.msk [vmem:[%s1962_s9 + $0x38] sm:$0xff] %vm1133_vm6, %v1197_v27 }
 0x3e4 PF: > { %s17_s23 = sadd.s32 1, %s1552_s23   ;;  %s2004_s21 = smov %s1548_s22 }
 0x3e5   : > { %p14_p5 = scmp.ge.s32.totalorder %s17_s23, 4   ;;  %s2005_s22 = smov %s2007_s24 }
 0x3e7   :  { %16 = sbr.rel (!%p14_p5) target bundleno = 2 (0x2), region = 88 }

</bundles_post_ra>
